<compile_context>
chip_gen: v7x
topology: tpu7x:2x2x1
jax: 0.10.0
libtpu: 0.0.40
codegen_flags: <defaults>
</compile_context>

<pallas_src>
import math

import jax
import jax.numpy as jnp
from jax import lax
from jax.experimental import pallas as pl
from jax.experimental.pallas import tpu as pltpu

SLOPE = 0.01          # LeakyReLU negative_slope (PyTorch default used by the module)
BN_EPS = 1e-5
_LANE = 128           # NOTE: on v6e/v7x, rounding Cout to 256 when Cout >= 256 fills the MXU better
_VMEM_LIMIT = 48 * 1024 * 1024          # scoped VMEM limit (fits v7x's 64 MiB physical)
_POOL_VMEM_BUDGET = 24 * 1024 * 1024    # per-step working-set target for the pool
_CONV_VMEM_BUDGET = 20 * 1024 * 1024    # per-step working-set target for the conv


def _round_up(x, m):
    return (x + m - 1) // m * m


def _largest_divisor_leq(n, cap):
    cap = max(1, min(cap, n))
    for d in range(cap, 0, -1):
        if n % d == 0:
            return d
    return 1


# ----------------------------- Pallas kernels ------------------------------ #

def _maxpool_kernel(x_ref, o_ref):
    # x_ref: (1, 2*tp, Wp, 2*C) f32  (W pairs pre-merged into the lane dim, free host reshape)
    # o_ref: (1, tp, Wp, C)     bf16
    tp, wp, c = o_ref.shape[1], o_ref.shape[2], o_ref.shape[3]
    x = x_ref[0].reshape(tp, 2, wp, 2 * c)                 # leading-dim split only
    v = jnp.maximum(x[:, 0], x[:, 1])                      # vertical 2:1 max  (tp, Wp, 2C)
    o_ref[0] = jnp.maximum(v[..., :c], v[..., c:]).astype(o_ref.dtype)   # horizontal max


def _conv3x3_kernel(top_ref, mid_ref, bot_ref, w_ref, b_ref, o_ref):
    # top_ref/bot_ref: (1, 1, Wp, Cin)   halo rows (clamped; zeroed at image borders)
    # mid_ref:         (1, TH, Wp, Cin)  row tile of the input
    # w_ref:           (9*Cin, Cp) bf16  per-tap weights (BN scale folded in)
    # b_ref:           (1, Cp) f32       pre-scaled bias
    # o_ref:           (1, TH, Wp, Cp)   Cp lane-padded to a multiple of 128
    rt = pl.program_id(1)
    n_rt = pl.num_programs(1)
    th, wp, cp = o_ref.shape[1], o_ref.shape[2], o_ref.shape[3]
    cin = mid_ref.shape[3]

    # assemble the spatially padded window (TH+2, Wp+2, Cin) in VMEM (no host jnp.pad)
    zero_row = jnp.zeros((1, wp, cin), mid_ref.dtype)
    top = jnp.where(rt > 0, top_ref[0], zero_row)
    bot = jnp.where(rt < n_rt - 1, bot_ref[0], zero_row)
    xw = jnp.concatenate([top, mid_ref[0], bot], axis=0)           # (TH+2, Wp, Cin)
    zcol = jnp.zeros((th + 2, 1, cin), xw.dtype)
    xw = jnp.concatenate([zcol, xw, zcol], axis=1)                 # (TH+2, Wp+2, Cin)

    # single in-VMEM im2col -> one MXU dot with K = 9*Cin (bf16 operands, f32 accumulate)
    taps = [xw[dy:dy + th, dx:dx + wp, :] for dy in range(3) for dx in range(3)]
    patches = jnp.concatenate(taps, axis=2).reshape(th * wp, 9 * cin)
    patches = patches.astype(jnp.bfloat16)

    acc = jnp.dot(patches, w_ref[...], preferred_element_type=jnp.float32)
    y = acc + b_ref[...]                                           # bias (+ folded BN), f32
    y = jnp.maximum(y, SLOPE * y)                                  # LeakyReLU on the VPU
    o_ref[0] = y.reshape(th, wp, cp).astype(o_ref.dtype)


# ------------------------------ host wrappers ------------------------------ #

def maxpool2x2(x_nhwc, *, out_dtype=jnp.bfloat16):
    """MaxPool2d(kernel_size=2, stride=2) on NHWC; in-kernel 2x2 max, bf16 output."""
    N, H, W, C = x_nhwc.shape
    Hp, Wp = H // 2, W // 2
    x = x_nhwc[:, :2 * Hp, :2 * Wp, :]          # PyTorch floor semantics (no-op when even)
    x = x.reshape(N, 2 * Hp, Wp, 2 * C)         # free reshape: merge W pairs into lanes

    lane_in = _round_up(2 * C, _LANE)
    lane_out = _round_up(C, _LANE)
    per_row = (2 * (2 * Wp * lane_in * x.dtype.itemsize)       # input rows, double-buffered
               + 2 * (Wp * lane_out * jnp.dtype(out_dtype).itemsize))
    tp = _largest_divisor_leq(Hp, max(1, _POOL_VMEM_BUDGET // per_row))

    out = pl.pallas_call(
        _maxpool_kernel,
        out_shape=jax.ShapeDtypeStruct((N, Hp, Wp, C), out_dtype),
        grid=(N, Hp // tp),
        in_specs=[pl.BlockSpec((1, 2 * tp, Wp, 2 * C), lambda n, r: (n, r, 0, 0))],
        out_specs=pl.BlockSpec((1, tp, Wp, C), lambda n, r: (n, r, 0, 0)),
        compiler_params=pltpu.CompilerParams(
            dimension_semantics=("parallel", "parallel"),
            vmem_limit_bytes=_VMEM_LIMIT),
    )(x)
    return out


def _conv_row_tile(Hp, Wp, Cx, Cp, out_itemsize):
    """Largest row-tile height TH (divisor of Hp) whose working set fits the budget."""
    lane_in = _round_up(Cx, _LANE)
    lane_k = _round_up(9 * Cx, _LANE)
    per_row = (2 * Wp * lane_in * 2        # main input tile (bf16), double-buffered
               + Wp * lane_in * 2          # assembled padded window
               + Wp * lane_k * 2           # im2col patches (bf16)
               + Wp * Cp * 4               # f32 accumulator / epilogue
               + 2 * Wp * Cp * out_itemsize)   # output tile, double-buffered
    resident = 9 * Cx * Cp * 2 + 4 * Cp    # weights + bias, resident across the grid
    cap = max(1, (_CONV_VMEM_BUDGET - resident) // max(per_row, 1))
    return _largest_divisor_leq(Hp, cap)


def conv3x3_bn_lrelu(x_nhwc, w_oihw, bias, *, out_dtype=jnp.bfloat16):
    """Conv2d(k=3, pad=1) + eval-mode BatchNorm2d + LeakyReLU(SLOPE), NHWC.

    `x_nhwc` may carry zero-padded trailing channels (>= the weight's Cin).  Output
    channels are lane-padded to a multiple of 128 (padding is exactly zero); the
    caller slices at the very end.
    """
    x_nhwc = x_nhwc.astype(jnp.bfloat16)            # MXU operands are bf16 (no-op in-pipeline)
    N, Hp, Wp, Cx = x_nhwc.shape
    Cout, Cw = w_oihw.shape[0], w_oihw.shape[1]
    assert Cx >= Cw, (Cx, Cw)
    Cp = _round_up(Cout, _LANE)

    # Fold eval-mode BN (gamma=1, beta=0, mean=0, var=1) into weights/bias (f32), then bf16.
    scale = 1.0 / math.sqrt(1.0 + BN_EPS)
    w = jnp.transpose(w_oihw.astype(jnp.float32), (2, 3, 1, 0)) * scale      # (3,3,Cw,Cout)
    w = jnp.pad(w, ((0, 0), (0, 0), (0, Cx - Cw), (0, Cp - Cout)))           # (3,3,Cx,Cp)
    w = w.reshape(9 * Cx, Cp).astype(jnp.bfloat16)
    b = jnp.pad(bias.astype(jnp.float32) * scale, (0, Cp - Cout)).reshape(1, Cp)

    TH = _conv_row_tile(Hp, Wp, Cx, Cp, jnp.dtype(out_dtype).itemsize)
    RT = Hp // TH

    out = pl.pallas_call(
        _conv3x3_kernel,
        out_shape=jax.ShapeDtypeStruct((N, Hp, Wp, Cp), out_dtype),
        grid=(N, RT),
        in_specs=[
            # 1-row halos above / below the tile; clamped indices, zeroed in-kernel at borders
            pl.BlockSpec((1, 1, Wp, Cx),
                         lambda n, r: (n, jnp.maximum(r * TH - 1, 0), 0, 0)),
            pl.BlockSpec((1, TH, Wp, Cx), lambda n, r: (n, r, 0, 0)),
            pl.BlockSpec((1, 1, Wp, Cx),
                         lambda n, r: (n, jnp.minimum(r * TH + TH, Hp - 1), 0, 0)),
            pl.BlockSpec((9 * Cx, Cp), lambda n, r: (0, 0)),
            pl.BlockSpec((1, Cp), lambda n, r: (0, 0)),
        ],
        out_specs=pl.BlockSpec((1, TH, Wp, Cp), lambda n, r: (n, r, 0, 0)),
        compiler_params=pltpu.CompilerParams(
            dimension_semantics=("parallel", "parallel"),
            vmem_limit_bytes=_VMEM_LIMIT),
    )(x_nhwc, x_nhwc, x_nhwc, w, b)
    return out


def init_down_params(key, in_channels, out_channels):
    """Deterministic init matching the PyTorch module's shapes/init scheme."""
    mid = out_channels
    k1, k2, k3, k4 = jax.random.split(key, 4)
    gain = math.sqrt(2.0 / (1.0 + SLOPE ** 2))            # kaiming, leaky_relu, fan_in
    fan1 = in_channels * 9
    w1 = jax.random.normal(k1, (mid, in_channels, 3, 3), jnp.float32) * (gain / math.sqrt(fan1))
    b1 = jax.random.uniform(k2, (mid,), jnp.float32,
                            -1.0 / math.sqrt(fan1), 1.0 / math.sqrt(fan1))
    fan2 = mid * 9
    w2 = jax.random.normal(k3, (out_channels, mid, 3, 3), jnp.float32) * (gain / math.sqrt(fan2))
    b2 = jax.random.uniform(k4, (out_channels,), jnp.float32,
                            -1.0 / math.sqrt(fan2), 1.0 / math.sqrt(fan2))
    return {"w1": w1, "b1": b1, "w2": w2, "b2": b2}


def down_forward(x_nchw, params):
    """Down.forward: MaxPool2d(2) then (conv3x3 -> BN -> LeakyReLU) x 2."""
    x = jnp.transpose(x_nchw, (0, 2, 3, 1))                       # NCHW -> NHWC
    x = maxpool2x2(x)                                             # bf16, no HBM slab pass
    x = conv3x3_bn_lrelu(x, params["w1"], params["b1"], out_dtype=jnp.bfloat16)
    x = conv3x3_bn_lrelu(x, params["w2"], params["b2"], out_dtype=jnp.float32)
    x = x[..., :params["w2"].shape[0]]                            # drop lane padding
    return jnp.transpose(x, (0, 3, 1, 2))                         # NHWC -> NCHW


# --------------------------- pure-JAX reference ----------------------------- #

def _ref_down(x_nchw, p):
    """Reference with matching precision (bf16 MXU operands, f32 accumulate/epilogue)."""
    scale = 1.0 / math.sqrt(1.0 + BN_EPS)

    def cbl(x, w, b, out_dtype):
        y = lax.conv_general_dilated(
            x.astype(jnp.bfloat16), (w * scale).astype(jnp.bfloat16),
            (1, 1), "SAME", dimension_numbers=("NCHW", "OIHW", "NCHW"),
            preferred_element_type=jnp.float32)
        y = y + (b * scale)[None, :, None, None]
        y = jnp.maximum(y, SLOPE * y)
        return y.astype(out_dtype)

    pool = lax.reduce_window(x_nchw, -jnp.inf, lax.max,
                             (1, 1, 2, 2), (1, 1, 2, 2), "VALID").astype(jnp.bfloat16)
    h = cbl(pool, p["w1"], p["b1"], jnp.bfloat16)
    return cbl(h, p["w2"], p["b2"], jnp.float32)


if __name__ == "__main__":
    key = jax.random.PRNGKey(0)
    kp, kx = jax.random.split(key)

    in_channels, out_channels = 4, 8
    params = init_down_params(kp, in_channels, out_channels)
    x = jax.random.normal(kx, (2, in_channels, 16, 16), jnp.float32)

    fwd = jax.jit(down_forward)
    y = jax.block_until_ready(fwd(x, params))
    assert y.shape == (2, out_channels, 8, 8), y.shape
    assert y.dtype == jnp.float32, y.dtype

    y_ref = _ref_down(x, params)
    max_err = float(jnp.max(jnp.abs(y - y_ref)))
    assert jnp.allclose(y, y_ref, atol=2e-2, rtol=2e-2), max_err

    print("KERNEL_OK")
</pallas_src>

<mosaic_0001>
module attributes {stable_mosaic.version = 11 : i64} {
  func.func @_conv3x3_kernel(%arg0: i32, %arg1: i32, %arg2: memref<1x1x8x4xbf16, #tpu.memory_space<vmem>>, %arg3: memref<1x8x8x4xbf16, #tpu.memory_space<vmem>>, %arg4: memref<1x1x8x4xbf16, #tpu.memory_space<vmem>>, %arg5: memref<36x128xbf16, #tpu.memory_space<vmem>>, %arg6: memref<1x128xf32, #tpu.memory_space<vmem>>, %arg7: memref<1x8x8x128xbf16, #tpu.memory_space<vmem>>) attributes {dimension_semantics = [#tpu.dimension_semantics<parallel>, #tpu.dimension_semantics<parallel>], iteration_bounds = array<i64: 2, 1>, scalar_prefetch = 0 : i64, scratch_operands = 0 : i64, tpu.core_type = #tpu.core_type<tc>, window_params = [{transform_indices = @transform_0, window_bounds = array<i64: 1, 1, 8, 4>}, {transform_indices = @transform_1, window_bounds = array<i64: 1, 8, 8, 4>}, {transform_indices = @transform_2, window_bounds = array<i64: 1, 1, 8, 4>}, {pipeline_mode = #tpu.pipeline_mode<synchronous>, transform_indices = @transform_3, window_bounds = array<i64: 36, 128>}, {pipeline_mode = #tpu.pipeline_mode<synchronous>, transform_indices = @transform_4, window_bounds = array<i64: 1, 128>}, {transform_indices = @transform_5, window_bounds = array<i64: 1, 8, 8, 128>}]} {
    %cst = arith.constant 0.000000e+00 : bf16
    %0 = vector.broadcast %cst : bf16 to vector<1x8x4xbf16>
    %c0_i32 = arith.constant 0 : i32
    %1 = arith.cmpi sgt, %arg1, %c0_i32 : i32
    %c0 = arith.constant 0 : index
    %c0_0 = arith.constant 0 : index
    %c0_1 = arith.constant 0 : index
    %c0_2 = arith.constant 0 : index
    %2 = vector.load %arg2[%c0, %c0_0, %c0_1, %c0_2] : memref<1x1x8x4xbf16, #tpu.memory_space<vmem>>, vector<1x1x8x4xbf16>
    %3 = vector.shape_cast %2 : vector<1x1x8x4xbf16> to vector<1x8x4xbf16>
    %4 = arith.select %1, %3, %0 : vector<1x8x4xbf16>
    %c0_i32_3 = arith.constant 0 : i32
    %5 = arith.cmpi slt, %arg1, %c0_i32_3 : i32
    %c0_4 = arith.constant 0 : index
    %c0_5 = arith.constant 0 : index
    %c0_6 = arith.constant 0 : index
    %c0_7 = arith.constant 0 : index
    %6 = vector.load %arg4[%c0_4, %c0_5, %c0_6, %c0_7] : memref<1x1x8x4xbf16, #tpu.memory_space<vmem>>, vector<1x1x8x4xbf16>
    %7 = vector.shape_cast %6 : vector<1x1x8x4xbf16> to vector<1x8x4xbf16>
    %8 = arith.select %5, %7, %0 : vector<1x8x4xbf16>
    %c0_8 = arith.constant 0 : index
    %c0_9 = arith.constant 0 : index
    %c0_10 = arith.constant 0 : index
    %c0_11 = arith.constant 0 : index
    %9 = vector.load %arg3[%c0_8, %c0_9, %c0_10, %c0_11] : memref<1x8x8x4xbf16, #tpu.memory_space<vmem>>, vector<1x8x8x4xbf16>
    %10 = vector.shape_cast %9 : vector<1x8x8x4xbf16> to vector<8x8x4xbf16>
    %11 = tpu.concatenate %4, %10, %8 in 0 : vector<1x8x4xbf16>, vector<8x8x4xbf16>, vector<1x8x4xbf16> -> vector<10x8x4xbf16>
    %cst_12 = arith.constant 0.000000e+00 : bf16
    %12 = vector.broadcast %cst_12 : bf16 to vector<10x1x4xbf16>
    %13 = tpu.concatenate %12, %11, %12 in 1 : vector<10x1x4xbf16>, vector<10x8x4xbf16>, vector<10x1x4xbf16> -> vector<10x10x4xbf16>
    %14 = vector.extract_strided_slice %13 {offsets = [0, 0, 0], sizes = [8, 8, 4], strides = [1, 1, 1]} : vector<10x10x4xbf16> to vector<8x8x4xbf16>
    %15 = vector.extract_strided_slice %13 {offsets = [0, 1, 0], sizes = [8, 8, 4], strides = [1, 1, 1]} : vector<10x10x4xbf16> to vector<8x8x4xbf16>
    %16 = vector.extract_strided_slice %13 {offsets = [0, 2, 0], sizes = [8, 8, 4], strides = [1, 1, 1]} : vector<10x10x4xbf16> to vector<8x8x4xbf16>
    %17 = vector.extract_strided_slice %13 {offsets = [1, 0, 0], sizes = [8, 8, 4], strides = [1, 1, 1]} : vector<10x10x4xbf16> to vector<8x8x4xbf16>
    %18 = vector.extract_strided_slice %13 {offsets = [1, 1, 0], sizes = [8, 8, 4], strides = [1, 1, 1]} : vector<10x10x4xbf16> to vector<8x8x4xbf16>
    %19 = vector.extract_strided_slice %13 {offsets = [1, 2, 0], sizes = [8, 8, 4], strides = [1, 1, 1]} : vector<10x10x4xbf16> to vector<8x8x4xbf16>
    %20 = vector.extract_strided_slice %13 {offsets = [2, 0, 0], sizes = [8, 8, 4], strides = [1, 1, 1]} : vector<10x10x4xbf16> to vector<8x8x4xbf16>
    %21 = vector.extract_strided_slice %13 {offsets = [2, 1, 0], sizes = [8, 8, 4], strides = [1, 1, 1]} : vector<10x10x4xbf16> to vector<8x8x4xbf16>
    %22 = vector.extract_strided_slice %13 {offsets = [2, 2, 0], sizes = [8, 8, 4], strides = [1, 1, 1]} : vector<10x10x4xbf16> to vector<8x8x4xbf16>
    %23 = tpu.concatenate %14, %15, %16, %17, %18, %19, %20, %21, %22 in 2 : vector<8x8x4xbf16>, vector<8x8x4xbf16>, vector<8x8x4xbf16>, vector<8x8x4xbf16>, vector<8x8x4xbf16>, vector<8x8x4xbf16>, vector<8x8x4xbf16>, vector<8x8x4xbf16>, vector<8x8x4xbf16> -> vector<8x8x36xbf16>
    %24 = vector.shape_cast %23 : vector<8x8x36xbf16> to vector<64x36xbf16>
    %c0_13 = arith.constant 0 : index
    %c0_14 = arith.constant 0 : index
    %25 = vector.load %arg5[%c0_13, %c0_14] : memref<36x128xbf16, #tpu.memory_space<vmem>>, vector<36x128xbf16>
    %cst_15 = arith.constant dense<0.000000e+00> : vector<64x128xf32>
    %26 = tpu.matmul %24, %25, %cst_15 {dimension_numbers = #tpu.dot_dimension_numbers<[1], [0], [0], [1], [0, 0, 1, 1], [], []>} : vector<64x36xbf16>, vector<36x128xbf16>, vector<64x128xf32> -> vector<64x128xf32>
    %c0_16 = arith.constant 0 : index
    %c0_17 = arith.constant 0 : index
    %27 = vector.load %arg6[%c0_16, %c0_17] : memref<1x128xf32, #tpu.memory_space<vmem>>, vector<1x128xf32>
    %28 = vector.broadcast %27 : vector<1x128xf32> to vector<64x128xf32>
    %29 = arith.addf %26, %28 : vector<64x128xf32>
    %cst_18 = arith.constant 0.00999999977 : f32
    %30 = vector.broadcast %cst_18 : f32 to vector<64x128xf32>
    %31 = arith.mulf %30, %29 : vector<64x128xf32>
    %32 = arith.maximumf %29, %31 : vector<64x128xf32>
    %33 = vector.shape_cast %32 : vector<64x128xf32> to vector<8x8x128xf32>
    %34 = arith.truncf %33 : vector<8x8x128xf32> to vector<8x8x128xbf16>
    %c0_19 = arith.constant 0 : index
    %c0_20 = arith.constant 0 : index
    %c0_21 = arith.constant 0 : index
    %c0_22 = arith.constant 0 : index
    %35 = vector.load %arg7[%c0_19, %c0_20, %c0_21, %c0_22] : memref<1x8x8x128xbf16, #tpu.memory_space<vmem>>, vector<1x8x8x128xbf16>
    %36 = vector.shape_cast %35 : vector<1x8x8x128xbf16> to vector<8x8x128xbf16>
    %37 = vector.shape_cast %34 : vector<8x8x128xbf16> to vector<1x8x8x128xbf16>
    tpu.vector_store %arg7[%c0_19, %c0_20, %c0_21, %c0_22], %37 {strides = array<i32>} : memref<1x8x8x128xbf16, #tpu.memory_space<vmem>>, vector<1x8x8x128xbf16>,
    return
  }
  func.func @transform_0(%arg0: i32, %arg1: i32) -> (i32, i32, i32, i32) {
    %c8_i32 = arith.constant 8 : i32
    %0 = arith.muli %arg1, %c8_i32 : i32
    %c1_i32 = arith.constant 1 : i32
    %1 = arith.subi %0, %c1_i32 : i32
    %c0_i32 = arith.constant 0 : i32
    %2 = arith.maxsi %1, %c0_i32 : i32
    %c0_i32_0 = arith.constant 0 : i32
    %c0_i32_1 = arith.constant 0 : i32
    %c0_i32_2 = arith.constant 0 : i32
    return %arg0, %2, %c0_i32_0, %c0_i32_1 : i32, i32, i32, i32
  }
  func.func @transform_1(%arg0: i32, %arg1: i32) -> (i32, i32, i32, i32) {
    %c0_i32 = arith.constant 0 : i32
    %c0_i32_0 = arith.constant 0 : i32
    %c0_i32_1 = arith.constant 0 : i32
    return %arg0, %arg1, %c0_i32, %c0_i32_0 : i32, i32, i32, i32
  }
  func.func @transform_2(%arg0: i32, %arg1: i32) -> (i32, i32, i32, i32) {
    %c8_i32 = arith.constant 8 : i32
    %0 = arith.muli %arg1, %c8_i32 : i32
    %c8_i32_0 = arith.constant 8 : i32
    %1 = arith.addi %0, %c8_i32_0 : i32
    %c7_i32 = arith.constant 7 : i32
    %2 = arith.minsi %1, %c7_i32 : i32
    %c0_i32 = arith.constant 0 : i32
    %c0_i32_1 = arith.constant 0 : i32
    %c0_i32_2 = arith.constant 0 : i32
    return %arg0, %2, %c0_i32, %c0_i32_1 : i32, i32, i32, i32
  }
  func.func @transform_3(%arg0: i32, %arg1: i32) -> (i32, i32) {
    %c0_i32 = arith.constant 0 : i32
    %c0_i32_0 = arith.constant 0 : i32
    %c0_i32_1 = arith.constant 0 : i32
    return %c0_i32, %c0_i32_0 : i32, i32
  }
  func.func @transform_4(%arg0: i32, %arg1: i32) -> (i32, i32) {
    %c0_i32 = arith.constant 0 : i32
    %c0_i32_0 = arith.constant 0 : i32
    %c0_i32_1 = arith.constant 0 : i32
    return %c0_i32, %c0_i32_0 : i32, i32
  }
  func.func @transform_5(%arg0: i32, %arg1: i32) -> (i32, i32, i32, i32) {
    %c0_i32 = arith.constant 0 : i32
    %c0_i32_0 = arith.constant 0 : i32
    %c0_i32_1 = arith.constant 0 : i32
    return %arg0, %arg1, %c0_i32, %c0_i32_0 : i32, i32, i32, i32
  }
}

module attributes {stable_mosaic.version = 11 : i64} {
  func.func @_maxpool_kernel(%arg0: i32, %arg1: i32, %arg2: memref<1x16x8x8xf32, #tpu.memory_space<vmem>>, %arg3: memref<1x8x8x4xbf16, #tpu.memory_space<vmem>>) attributes {dimension_semantics = [#tpu.dimension_semantics<parallel>, #tpu.dimension_semantics<parallel>], iteration_bounds = array<i64: 2, 1>, scalar_prefetch = 0 : i64, scratch_operands = 0 : i64, tpu.core_type = #tpu.core_type<tc>, window_params = [{transform_indices = @transform_0, window_bounds = array<i64: 1, 16, 8, 8>}, {transform_indices = @transform_1, window_bounds = array<i64: 1, 8, 8, 4>}]} {
    %c0 = arith.constant 0 : index
    %c0_0 = arith.constant 0 : index
    %c0_1 = arith.constant 0 : index
    %c0_2 = arith.constant 0 : index
    %0 = vector.load %arg2[%c0, %c0_0, %c0_1, %c0_2] : memref<1x16x8x8xf32, #tpu.memory_space<vmem>>, vector<1x16x8x8xf32>
    %1 = vector.shape_cast %0 : vector<1x16x8x8xf32> to vector<16x8x8xf32>
    %2 = vector.shape_cast %1 : vector<16x8x8xf32> to vector<8x2x8x8xf32>
    %3 = vector.extract_strided_slice %2 {offsets = [0, 0, 0, 0], sizes = [8, 1, 8, 8], strides = [1, 1, 1, 1]} : vector<8x2x8x8xf32> to vector<8x1x8x8xf32>
    %4 = vector.shape_cast %3 : vector<8x1x8x8xf32> to vector<8x8x8xf32>
    %5 = vector.extract_strided_slice %2 {offsets = [0, 1, 0, 0], sizes = [8, 1, 8, 8], strides = [1, 1, 1, 1]} : vector<8x2x8x8xf32> to vector<8x1x8x8xf32>
    %6 = vector.shape_cast %5 : vector<8x1x8x8xf32> to vector<8x8x8xf32>
    %7 = arith.maximumf %4, %6 : vector<8x8x8xf32>
    %8 = vector.extract_strided_slice %7 {offsets = [0, 0, 0], sizes = [8, 8, 4], strides = [1, 1, 1]} : vector<8x8x8xf32> to vector<8x8x4xf32>
    %9 = vector.extract_strided_slice %7 {offsets = [0, 0, 4], sizes = [8, 8, 4], strides = [1, 1, 1]} : vector<8x8x8xf32> to vector<8x8x4xf32>
    %10 = arith.maximumf %8, %9 : vector<8x8x4xf32>
    %11 = arith.truncf %10 : vector<8x8x4xf32> to vector<8x8x4xbf16>
    %c0_3 = arith.constant 0 : index
    %c0_4 = arith.constant 0 : index
    %c0_5 = arith.constant 0 : index
    %c0_6 = arith.constant 0 : index
    %12 = vector.load %arg3[%c0_3, %c0_4, %c0_5, %c0_6] : memref<1x8x8x4xbf16, #tpu.memory_space<vmem>>, vector<1x8x8x4xbf16>
    %13 = vector.shape_cast %12 : vector<1x8x8x4xbf16> to vector<8x8x4xbf16>
    %14 = vector.shape_cast %11 : vector<8x8x4xbf16> to vector<1x8x8x4xbf16>
    tpu.vector_store %arg3[%c0_3, %c0_4, %c0_5, %c0_6], %14 {strides = array<i32>} : memref<1x8x8x4xbf16, #tpu.memory_space<vmem>>, vector<1x8x8x4xbf16>,
    return
  }
  func.func @transform_0(%arg0: i32, %arg1: i32) -> (i32, i32, i32, i32) {
    %c0_i32 = arith.constant 0 : i32
    %c0_i32_0 = arith.constant 0 : i32
    %c0_i32_1 = arith.constant 0 : i32
    return %arg0, %arg1, %c0_i32, %c0_i32_0 : i32, i32, i32, i32
  }
  func.func @transform_1(%arg0: i32, %arg1: i32) -> (i32, i32, i32, i32) {
    %c0_i32 = arith.constant 0 : i32
    %c0_i32_0 = arith.constant 0 : i32
    %c0_i32_1 = arith.constant 0 : i32
    return %arg0, %arg1, %c0_i32, %c0_i32_0 : i32, i32, i32, i32
  }
}

module attributes {stable_mosaic.version = 11 : i64} {
  func.func @_conv3x3_kernel(%arg0: i32, %arg1: i32, %arg2: memref<1x1x8x128xbf16, #tpu.memory_space<vmem>>, %arg3: memref<1x8x8x128xbf16, #tpu.memory_space<vmem>>, %arg4: memref<1x1x8x128xbf16, #tpu.memory_space<vmem>>, %arg5: memref<1152x128xbf16, #tpu.memory_space<vmem>>, %arg6: memref<1x128xf32, #tpu.memory_space<vmem>>, %arg7: memref<1x8x8x128xf32, #tpu.memory_space<vmem>>) attributes {dimension_semantics = [#tpu.dimension_semantics<parallel>, #tpu.dimension_semantics<parallel>], iteration_bounds = array<i64: 2, 1>, scalar_prefetch = 0 : i64, scratch_operands = 0 : i64, tpu.core_type = #tpu.core_type<tc>, window_params = [{transform_indices = @transform_0, window_bounds = array<i64: 1, 1, 8, 128>}, {transform_indices = @transform_1, window_bounds = array<i64: 1, 8, 8, 128>}, {transform_indices = @transform_2, window_bounds = array<i64: 1, 1, 8, 128>}, {pipeline_mode = #tpu.pipeline_mode<synchronous>, transform_indices = @transform_3, window_bounds = array<i64: 1152, 128>}, {pipeline_mode = #tpu.pipeline_mode<synchronous>, transform_indices = @transform_4, window_bounds = array<i64: 1, 128>}, {transform_indices = @transform_5, window_bounds = array<i64: 1, 8, 8, 128>}]} {
    %cst = arith.constant 0.000000e+00 : bf16
    %0 = vector.broadcast %cst : bf16 to vector<1x8x128xbf16>
    %c0_i32 = arith.constant 0 : i32
    %1 = arith.cmpi sgt, %arg1, %c0_i32 : i32
    %c0 = arith.constant 0 : index
    %c0_0 = arith.constant 0 : index
    %c0_1 = arith.constant 0 : index
    %c0_2 = arith.constant 0 : index
    %2 = vector.load %arg2[%c0, %c0_0, %c0_1, %c0_2] : memref<1x1x8x128xbf16, #tpu.memory_space<vmem>>, vector<1x1x8x128xbf16>
    %3 = vector.shape_cast %2 : vector<1x1x8x128xbf16> to vector<1x8x128xbf16>
    %4 = arith.select %1, %3, %0 : vector<1x8x128xbf16>
    %c0_i32_3 = arith.constant 0 : i32
    %5 = arith.cmpi slt, %arg1, %c0_i32_3 : i32
    %c0_4 = arith.constant 0 : index
    %c0_5 = arith.constant 0 : index
    %c0_6 = arith.constant 0 : index
    %c0_7 = arith.constant 0 : index
    %6 = vector.load %arg4[%c0_4, %c0_5, %c0_6, %c0_7] : memref<1x1x8x128xbf16, #tpu.memory_space<vmem>>, vector<1x1x8x128xbf16>
    %7 = vector.shape_cast %6 : vector<1x1x8x128xbf16> to vector<1x8x128xbf16>
    %8 = arith.select %5, %7, %0 : vector<1x8x128xbf16>
    %c0_8 = arith.constant 0 : index
    %c0_9 = arith.constant 0 : index
    %c0_10 = arith.constant 0 : index
    %c0_11 = arith.constant 0 : index
    %9 = vector.load %arg3[%c0_8, %c0_9, %c0_10, %c0_11] : memref<1x8x8x128xbf16, #tpu.memory_space<vmem>>, vector<1x8x8x128xbf16>
    %10 = vector.shape_cast %9 : vector<1x8x8x128xbf16> to vector<8x8x128xbf16>
    %11 = tpu.concatenate %4, %10, %8 in 0 : vector<1x8x128xbf16>, vector<8x8x128xbf16>, vector<1x8x128xbf16> -> vector<10x8x128xbf16>
    %cst_12 = arith.constant 0.000000e+00 : bf16
    %12 = vector.broadcast %cst_12 : bf16 to vector<10x1x128xbf16>
    %13 = tpu.concatenate %12, %11, %12 in 1 : vector<10x1x128xbf16>, vector<10x8x128xbf16>, vector<10x1x128xbf16> -> vector<10x10x128xbf16>
    %14 = vector.extract_strided_slice %13 {offsets = [0, 0, 0], sizes = [8, 8, 128], strides = [1, 1, 1]} : vector<10x10x128xbf16> to vector<8x8x128xbf16>
    %15 = vector.extract_strided_slice %13 {offsets = [0, 1, 0], sizes = [8, 8, 128], strides = [1, 1, 1]} : vector<10x10x128xbf16> to vector<8x8x128xbf16>
    %16 = vector.extract_strided_slice %13 {offsets = [0, 2, 0], sizes = [8, 8, 128], strides = [1, 1, 1]} : vector<10x10x128xbf16> to vector<8x8x128xbf16>
    %17 = vector.extract_strided_slice %13 {offsets = [1, 0, 0], sizes = [8, 8, 128], strides = [1, 1, 1]} : vector<10x10x128xbf16> to vector<8x8x128xbf16>
    %18 = vector.extract_strided_slice %13 {offsets = [1, 1, 0], sizes = [8, 8, 128], strides = [1, 1, 1]} : vector<10x10x128xbf16> to vector<8x8x128xbf16>
    %19 = vector.extract_strided_slice %13 {offsets = [1, 2, 0], sizes = [8, 8, 128], strides = [1, 1, 1]} : vector<10x10x128xbf16> to vector<8x8x128xbf16>
    %20 = vector.extract_strided_slice %13 {offsets = [2, 0, 0], sizes = [8, 8, 128], strides = [1, 1, 1]} : vector<10x10x128xbf16> to vector<8x8x128xbf16>
    %21 = vector.extract_strided_slice %13 {offsets = [2, 1, 0], sizes = [8, 8, 128], strides = [1, 1, 1]} : vector<10x10x128xbf16> to vector<8x8x128xbf16>
    %22 = vector.extract_strided_slice %13 {offsets = [2, 2, 0], sizes = [8, 8, 128], strides = [1, 1, 1]} : vector<10x10x128xbf16> to vector<8x8x128xbf16>
    %23 = tpu.concatenate %14, %15, %16, %17, %18, %19, %20, %21, %22 in 2 : vector<8x8x128xbf16>, vector<8x8x128xbf16>, vector<8x8x128xbf16>, vector<8x8x128xbf16>, vector<8x8x128xbf16>, vector<8x8x128xbf16>, vector<8x8x128xbf16>, vector<8x8x128xbf16>, vector<8x8x128xbf16> -> vector<8x8x1152xbf16>
    %24 = vector.shape_cast %23 : vector<8x8x1152xbf16> to vector<64x1152xbf16>
    %c0_13 = arith.constant 0 : index
    %c0_14 = arith.constant 0 : index
    %25 = vector.load %arg5[%c0_13, %c0_14] : memref<1152x128xbf16, #tpu.memory_space<vmem>>, vector<1152x128xbf16>
    %cst_15 = arith.constant dense<0.000000e+00> : vector<64x128xf32>
    %26 = tpu.matmul %24, %25, %cst_15 {dimension_numbers = #tpu.dot_dimension_numbers<[1], [0], [0], [1], [0, 0, 1, 1], [], []>} : vector<64x1152xbf16>, vector<1152x128xbf16>, vector<64x128xf32> -> vector<64x128xf32>
    %c0_16 = arith.constant 0 : index
    %c0_17 = arith.constant 0 : index
    %27 = vector.load %arg6[%c0_16, %c0_17] : memref<1x128xf32, #tpu.memory_space<vmem>>, vector<1x128xf32>
    %28 = vector.broadcast %27 : vector<1x128xf32> to vector<64x128xf32>
    %29 = arith.addf %26, %28 : vector<64x128xf32>
    %cst_18 = arith.constant 0.00999999977 : f32
    %30 = vector.broadcast %cst_18 : f32 to vector<64x128xf32>
    %31 = arith.mulf %30, %29 : vector<64x128xf32>
    %32 = arith.maximumf %29, %31 : vector<64x128xf32>
    %33 = vector.shape_cast %32 : vector<64x128xf32> to vector<8x8x128xf32>
    %c0_19 = arith.constant 0 : index
    %c0_20 = arith.constant 0 : index
    %c0_21 = arith.constant 0 : index
    %c0_22 = arith.constant 0 : index
    %34 = vector.load %arg7[%c0_19, %c0_20, %c0_21, %c0_22] : memref<1x8x8x128xf32, #tpu.memory_space<vmem>>, vector<1x8x8x128xf32>
    %35 = vector.shape_cast %34 : vector<1x8x8x128xf32> to vector<8x8x128xf32>
    %36 = vector.shape_cast %33 : vector<8x8x128xf32> to vector<1x8x8x128xf32>
    tpu.vector_store %arg7[%c0_19, %c0_20, %c0_21, %c0_22], %36 {strides = array<i32>} : memref<1x8x8x128xf32, #tpu.memory_space<vmem>>, vector<1x8x8x128xf32>,
    return
  }
  func.func @transform_0(%arg0: i32, %arg1: i32) -> (i32, i32, i32, i32) {
    %c8_i32 = arith.constant 8 : i32
    %0 = arith.muli %arg1, %c8_i32 : i32
    %c1_i32 = arith.constant 1 : i32
    %1 = arith.subi %0, %c1_i32 : i32
    %c0_i32 = arith.constant 0 : i32
    %2 = arith.maxsi %1, %c0_i32 : i32
    %c0_i32_0 = arith.constant 0 : i32
    %c0_i32_1 = arith.constant 0 : i32
    %c0_i32_2 = arith.constant 0 : i32
    return %arg0, %2, %c0_i32_0, %c0_i32_1 : i32, i32, i32, i32
  }
  func.func @transform_1(%arg0: i32, %arg1: i32) -> (i32, i32, i32, i32) {
    %c0_i32 = arith.constant 0 : i32
    %c0_i32_0 = arith.constant 0 : i32
    %c0_i32_1 = arith.constant 0 : i32
    return %arg0, %arg1, %c0_i32, %c0_i32_0 : i32, i32, i32, i32
  }
  func.func @transform_2(%arg0: i32, %arg1: i32) -> (i32, i32, i32, i32) {
    %c8_i32 = arith.constant 8 : i32
    %0 = arith.muli %arg1, %c8_i32 : i32
    %c8_i32_0 = arith.constant 8 : i32
    %1 = arith.addi %0, %c8_i32_0 : i32
    %c7_i32 = arith.constant 7 : i32
    %2 = arith.minsi %1, %c7_i32 : i32
    %c0_i32 = arith.constant 0 : i32
    %c0_i32_1 = arith.constant 0 : i32
    %c0_i32_2 = arith.constant 0 : i32
    return %arg0, %2, %c0_i32, %c0_i32_1 : i32, i32, i32, i32
  }
  func.func @transform_3(%arg0: i32, %arg1: i32) -> (i32, i32) {
    %c0_i32 = arith.constant 0 : i32
    %c0_i32_0 = arith.constant 0 : i32
    %c0_i32_1 = arith.constant 0 : i32
    return %c0_i32, %c0_i32_0 : i32, i32
  }
  func.func @transform_4(%arg0: i32, %arg1: i32) -> (i32, i32) {
    %c0_i32 = arith.constant 0 : i32
    %c0_i32_0 = arith.constant 0 : i32
    %c0_i32_1 = arith.constant 0 : i32
    return %c0_i32, %c0_i32_0 : i32, i32
  }
  func.func @transform_5(%arg0: i32, %arg1: i32) -> (i32, i32, i32, i32) {
    %c0_i32 = arith.constant 0 : i32
    %c0_i32_0 = arith.constant 0 : i32
    %c0_i32_1 = arith.constant 0 : i32
    return %arg0, %arg1, %c0_i32, %c0_i32_0 : i32, i32, i32, i32
  }
}

</mosaic_0001>

<bundles_post_ra>
// kernel: down_forward.3
= control target key start
LH: loop header
LB: loop body
LE: loop exit
PB: predicated region body
PF: predicated region fallthrough
CT: control target
= control target key end

     0   :  { %s417_s6 = smov 0   ;;  %s419_s7 = smov 0   ;;  %s462_s0 = inlined_call_operand.vmem [shape: f32[2,16,8,8], index: 0, kind: input, shape index: {}]   ;;  %s463_s1 = inlined_call_operand.vmem [shape: bf16[2,8,8,4], index: 1, kind: output, shape index: {}]  }
   0x1   :  { %s421_s8 = smov 0  }
   0x2 LB: > { %s23_s9 = sadd.s32 1, %s400_s7  ;;  %p328_p0 = scmp.ge.s32.totalorder %s404_s8, 1  ;;  %s404_s8 = sphi %s421_s8, %s11_s8   ;;  %s400_s7 = sphi %s419_s7, %s465_s7   ;;  %s396_s6 = sphi %s417_s6, %s464_s6  }
   0x3   : > { %p25_p1 = scmp.ge.s32.totalorder %s23_s9, 2  ;;  %p108_p2 = scmp.lt.s32.totalorder %s404_s8, 3 }
   0x5   : > { %s467_s9 = smov (%p25_p1, %s23_s9), 0  ;;  %p109_p3 = pnand %p328_p0, %p108_p2 }
   0x6   : > { %p137_p4 = scmp.lt.s32.totalorder (!%p109_p3), %s396_s6, 1  ;;  %s406_s14 = smov (!%p109_p3), 124   ;;  %vm228_vm0 = vcmask (!%p109_p3), 27648  }
   0x7   : > { %112 = sbr.rel (%p109_p3) target bundleno = 150 (0x96), region = 24 }
   0xe   : > { %s469_s6 = smov (!%p137_p4, %s396_s6), 1 }
   0xf   : > { %s335_s10 = sshll.u32 %s469_s6, 7  ;;  %s336_s15 = sshll.u32 %s469_s6, 5 }
  0x10   : > { %s144_s13 = scalar_lea.vmem %s462_s0, %s335_s10  ;;  %s154_s18 = scalar_lea.vmem %s463_s1, %s336_s15 }
  0x11   : > { %v164_v0 = vld [vmem:[%s144_s13 + $0x40] sm:$0xff]  ;;  %v165_v1 = vld [vmem:[%s144_s13 + $0x48] sm:$0xff]  ;;  %v166_v2 = vld [vmem:[%s144_s13 + $0x50] sm:$0xff] }
  0x12   : > { %v167_v3 = vld [vmem:[%s144_s13 + $0x58] sm:$0xff]  ;;  %v176_v4 = vmax.f32 %v164_v0, %v165_v1  ;;  %v156_v5 = vld [vmem:[%s144_s13] sm:$0xff]  ;;  %v157_v6 = vld [vmem:[%s144_s13 + $0x8] sm:$0xff] }
  0x13   : > { %v177_v7 = vmax.f32 %v166_v2, %v167_v3  ;;  %v158_v8 = vld [vmem:[%s144_s13 + $0x10] sm:$0xff]  ;;  %v159_v9 = vld [vmem:[%s144_s13 + $0x18] sm:$0xff]  ;;  %v172_v10 = vmax.f32 %v156_v5, %v157_v6  ;;  %v168_v11 = vld [vmem:[%s144_s13 + $0x60] sm:$0xff] }
  0x14   : > { %v173_v12 = vmax.f32 %v158_v8, %v159_v9  ;;  %v169_v13 = vld [vmem:[%s144_s13 + $0x68] sm:$0xff]  ;;  %v170_v14 = vld [vmem:[%s144_s13 + $0x70] sm:$0xff]  ;;  %v171_v15 = vld [vmem:[%s144_s13 + $0x78] sm:$0xff] }
  0x15   : > { %v372_v16 = vpack.i.bf16 %v177_v7, %v176_v4  ;;  %v178_v17 = vmax.f32 %v168_v11, %v169_v13  ;;  %v179_v18 = vmax.f32 %v170_v14, %v171_v15  ;;  %v160_v19 = vld [vmem:[%s144_s13 + $0x20] sm:$0xff]  ;;  %v161_v20 = vld [vmem:[%s144_s13 + $0x28] sm:$0xff]  ;;  %v162_v21 = vld [vmem:[%s144_s13 + $0x30] sm:$0xff] }
  0x16   : > { %v362_v22 = vpack.i.bf16 %v173_v12, %v172_v10  ;;  %v163_v23 = vld [vmem:[%s144_s13 + $0x38] sm:$0xff]  ;;  %v174_v24 = vmax.f32 %v160_v19, %v161_v20 }
  0x17   : > { %373 = vrot.lane.b32.xlu1 %v372_v16, %s406_s14  ;;  %v377_v25 = vpack.i.bf16 %v179_v18, %v178_v17  ;;  %v175_v26 = vmax.f32 %v162_v21, %v163_v23 }
  0x18   : > { %363 = vrot.lane.b32.xlu0 %v362_v22, %s406_s14 }
  0x19   : > { %v367_v27 = vpack.i.bf16 %v175_v26, %v174_v24 }
  0x1b   : > { %378 = vrot.lane.b32.xlu1 %v377_v25, %s406_s14 }
  0x1c   : > { %368 = vrot.lane.b32.xlu0 %v367_v27, %s406_s14 }
  0x89   : > { %v374_v28 = vpop.permute.xlu1 %373 }
  0x8a   : > { %v376_v29 = vunpack.i.h.bf16 %v374_v28  ;;  %v375_v30 = vunpack.i.l.bf16 %v374_v28  ;;  %v364_v31 = vpop.permute.xlu0 %363 }
  0x8b   : > { %v366_v32 = vunpack.i.h.bf16 %v364_v31  ;;  %v365_v33 = vunpack.i.l.bf16 %v364_v31 }
  0x8c   : > { %v217_v34 = vmax.f32 %v177_v7, %v376_v29  ;;  %v216_v35 = vmax.f32 %v176_v4, %v375_v30 }
  0x8d   : > { %v213_v36 = vmax.f32 %v173_v12, %v366_v32  ;;  %v212_v37 = vmax.f32 %v172_v10, %v365_v33  ;;  %v379_v38 = vpop.permute.xlu1 %378 }
  0x8e   : > { %v225_v39 = vpack.c.bf16 %v217_v34, %v217_v34  ;;  %v224_v40 = vpack.c.bf16 %v216_v35, %v216_v35  ;;  %v381_v41 = vunpack.i.h.bf16 %v379_v38  ;;  %v380_v42 = vunpack.i.l.bf16 %v379_v38  ;;  %v369_v43 = vpop.permute.xlu0 %368 }
  0x8f   : > { %v221_v44 = vpack.c.bf16 %v213_v36, %v213_v36  ;;  %v220_v45 = vpack.c.bf16 %v212_v37, %v212_v37  ;;  %v371_v46 = vunpack.i.h.bf16 %v369_v43  ;;  %v370_v47 = vunpack.i.l.bf16 %v369_v43 }
  0x90   : > { %234 = vst.msk [vmem:[%s154_s18 + $0x14] sm:$0xf] %vm228_vm0, %v225_v39  ;;  %233 = vst.msk [vmem:[%s154_s18 + $0x10] sm:$0xf] %vm228_vm0, %v224_v40  ;;  %v219_v48 = vmax.f32 %v179_v18, %v381_v41  ;;  %v218_v49 = vmax.f32 %v178_v17, %v380_v42 }
  0x91   : > { %230 = vst.msk [vmem:[%s154_s18 + $0x4] sm:$0xf] %vm228_vm0, %v221_v44  ;;  %229 = vst.msk [vmem:[%s154_s18] sm:$0xf] %vm228_vm0, %v220_v45  ;;  %v215_v50 = vmax.f32 %v175_v26, %v371_v46  ;;  %v214_v51 = vmax.f32 %v174_v24, %v370_v47 }
  0x92   : > { %v227_v52 = vpack.c.bf16 %v219_v48, %v219_v48  ;;  %v226_v53 = vpack.c.bf16 %v218_v49, %v218_v49 }
  0x93   : > { %v223_v54 = vpack.c.bf16 %v215_v50, %v215_v50  ;;  %v222_v55 = vpack.c.bf16 %v214_v51, %v214_v51 }
  0x94   : > { %236 = vst.msk [vmem:[%s154_s18 + $0x1c] sm:$0xf] %vm228_vm0, %v227_v52  ;;  %235 = vst.msk [vmem:[%s154_s18 + $0x18] sm:$0xf] %vm228_vm0, %v226_v53 }
  0x95   : > { %232 = vst.msk [vmem:[%s154_s18 + $0xc] sm:$0xf] %vm228_vm0, %v223_v54  ;;  %231 = vst.msk [vmem:[%s154_s18 + $0x8] sm:$0xf] %vm228_vm0, %v222_v55 }
  0x96 PF: > { %s11_s8 = sadd.s32 1, %s404_s8   ;;  %s464_s6 = smov %s400_s7 }
  0x97   : > { %p8_p5 = scmp.ge.s32.totalorder %s11_s8, 4   ;;  %s465_s7 = smov %s467_s9 }
  0x99   :  { %10 = sbr.rel (!%p8_p5) target bundleno = 2 (0x2), region = 54 }

// kernel: down_forward.4
= control target key start
LH: loop header
LB: loop body
LE: loop exit
PB: predicated region body
PF: predicated region fallthrough
CT: control target
= control target key end

     0   :  { %s1378_s18 = smov 0   ;;  %s1380_s19 = smov 0   ;;  %s1743_s0 = inlined_call_operand.vmem [shape: bf16[2,8,8,4], index: 0, kind: input, shape index: {}, may-alias: {0,1,2}]   ;;  %s1744_s1 = inlined_call_operand.vmem [shape: bf16[2,8,8,4], index: 1, kind: input, shape index: {}, may-alias: {0,1,2}]   ;;  %s1745_s2 = inlined_call_operand.vmem [shape: bf16[2,8,8,4], index: 2, kind: input, shape index: {}, may-alias: {0,1,2}]   ;;  %s1746_s3 = inlined_call_operand.vmem [shape: bf16[36,128], index: 3, kind: input, shape index: {}]   ;;  %s1747_s4 = inlined_call_operand.vmem [shape: f32[1,128], index: 4, kind: input, shape index: {}]   ;;  %s1748_s5 = inlined_call_operand.vmem [shape: bf16[2,8,8,128], index: 5, kind: output, shape index: {}]  }
   0x1   :  { %s1382_s0 = smov 0  }
   0x2 LB: > { %s27_s2 = sadd.s32 1, %s1333_s19  ;;  %p1181_p0 = scmp.ge.s32.totalorder %s1337_s0, 1  ;;  %s1337_s0 = sphi %s1382_s0, %s15_s0   ;;  %s1333_s19 = sphi %s1380_s19, %s1754_s19   ;;  %s1329_s18 = sphi %s1378_s18, %s1753_s18  }
   0x3   : > { %p29_p1 = scmp.ge.s32.totalorder %s27_s2, 2  ;;  %p270_p2 = scmp.lt.s32.totalorder %s1337_s0, 3 }
   0x5   : > { %s1756_s2 = smov (%p29_p1, %s27_s2), 0  ;;  %p271_p3 = pnand %p1181_p0, %p270_p2 }
   0x6   : > { %v1339_v0 = vmov (!%p271_p3), 0   ;;  %vm513_vm0 = vcmask (!%p271_p3), 1040384   ;;  %vm514_vm1 = vsmask.f32 (!%p271_p3), 256  ;;  %p347_p4 = scmp.lt.s32.totalorder (!%p271_p3), %s1329_s18, 1  ;;  %vm526_vm3 = vcmask (!%p271_p3), 1044480  }
   0x7   : > { %274 = sbr.rel (%p271_p3) target bundleno = 494 (0x1ee), region = 40  ;;  %v1190_v1 = vcombine.low (!%p271_p3), %v1339_v0, %v1339_v0  ;;  %vm527_vm2 = vsmask.f32 (!%p271_p3), 4352  ;;  %vm1398_vm4 = vmand (!%p271_p3), %vm513_vm0, %vm514_vm1  ;;  %s1340_s24 = smov (!%p271_p3), 8   ;;  %vm953_vm6 = vcmask (!%p271_p3), 1041408   ;;  %vm757_vm7 = vcmask (!%p271_p3), 31744  }
   0x8   : > { %vm1403_vm5 = vmand (!%p271_p3), %vm526_vm3, %vm527_vm2  ;;  %s1341_s25 = smov (!%p271_p3), 4   ;;  %s1342_s26 = smov (!%p271_p3), 12   ;;  %vm774_vm8 = vcmask (!%p271_p3), 64512   ;;  %vm791_vm9 = vcmask (!%p271_p3), 97280   ;;  %vm808_vm10 = vcmask (!%p271_p3), 130048   ;;  %vm825_vm11 = vcmask (!%p271_p3), 162816  }
   0x9   : > { %v434_v2 = vshrl.u32 (!%p271_p3), %v1190_v1, 16  ;;  %v437_v3 = vshll.u32 (!%p271_p3), %v1190_v1, 16  ;;  %s1343_s27 = smov (!%p271_p3), 16   ;;  %s1344_s28 = smov (!%p271_p3), 20   ;;  %vm842_vm12 = vcmask (!%p271_p3), 195584   ;;  %vm859_vm13 = vcmask (!%p271_p3), 228352  }
   0xa   : > { %s1345_s29 = smov (!%p271_p3), 24   ;;  %s1346_s30 = smov (!%p271_p3), 28   ;;  %vm876_vm14 = vcmask (!%p271_p3), 261120   ;;  %vm940_vm15 = vcmask (!%p271_p3), 293888  }
   0xb   : > { %v436_v4 = vrot.slane (!%p271_p3), %v434_v2, 7  ;;  %s1347_s12 = smov (!%p271_p3), 32  }
   0xd   : > { %v439_v7 = vor.u32 (!%p271_p3), %v437_v3, %v436_v4 }
   0xe   : > { %s1758_s18 = smov (!%p347_p4, %s1329_s18), 1 }
   0xf   : > { %s1215_s20 = sshll.u32 %s1758_s18, 5  ;;  %v516_v11 = vsel %vm1398_vm4, 0, %v439_v7 }
  0x10   : > { %s1412_s23 = scalar_lea.vmem %s1744_s1, %s1215_s20  ;;  %v1421_v14 = vsel %vm1403_vm5, %v516_v11, 0  ;;  %s380_s17 = scalar_lea.vmem %s1748_s5, %s1215_s20 }
  0x11   : > { %v1304_v8 = vld [vmem:[%s1412_s23] ss:$0 sps:$4 sm:$0xff]   ;;  %v1305_v9 = vld [vmem:[%s1412_s23 + $0xc] ss:$0 sps:$4 sm:$0xff]   ;;  %v1306_v10 = vld [vmem:[%s1412_s23 + $0x10] ss:$0 sps:$4 sm:$0xff]  }
  0x12   : > { %v441_v12 = vshrl.u32 %v1304_v8, 16  ;;  %v444_v13 = vshll.u32 %v1304_v8, 16  ;;  %v462_v15 = vshrl.u32 %v1305_v9, 16  ;;  %v465_v16 = vshll.u32 %v1305_v9, 16  ;;  %v1307_v18 = vld [vmem:[%s1412_s23 + $0x4] ss:$0 sps:$4 sm:$0xff]  }
  0x13   : > { %v469_v17 = vshrl.u32 %v1306_v10, 16  ;;  %v619_v19 = vrot.slane %v1421_v14, 1  ;;  %v540_v20 = vshrl.u32 %v1421_v14, 16  ;;  %v542_v21 = vshll.u32 %v1421_v14, 16  ;;  %v1308_v27 = vld [vmem:[%s1412_s23 + $0x14] ss:$0 sps:$4 sm:$0xff]  }
  0x14   : > { %v443_v22 = vrot.slane %v441_v12, 7  ;;  %v464_v23 = vrot.slane %v462_v15, 7  ;;  %v472_v25 = vshll.u32 %v1306_v10, 16  ;;  %v448_v26 = vshrl.u32 %v1307_v18, 16  ;;  %v1309_v31 = vld [vmem:[%s1412_s23 + $0x8] ss:$0 sps:$4 sm:$0xff]  }
  0x15   : > { %v471_v24 = vrot.slane %v469_v17, 7  ;;  %627 = vrot.lane.b32.xlu0 %v619_v19, %s1340_s24  ;;  %v544_v28 = vrot.slane %v542_v21, 1  ;;  %v451_v30 = vshll.u32 %v1307_v18, 16  ;;  %v476_v37 = vshrl.u32 %v1308_v27, 16  ;;  %v1310_v55 = vld [vmem:[%s1412_s23 + $0x18] ss:$0 sps:$4 sm:$0xff]  }
  0x16   : > { %v446_v29 = vor.u32 %v444_v13, %v443_v22  ;;  %v467_v32 = vor.u32 %v465_v16, %v464_v23  ;;  %v450_v34 = vrot.slane %v448_v26, 7  ;;  %v455_v38 = vshrl.u32 %v1309_v31, 16 }
  0x17   : > { %v474_v33 = vor.u32 %v472_v25, %v471_v24  ;;  %v1432_v35 = vor.u32 %v544_v28, %v540_v20  ;;  %v479_v46 = vshll.u32 %v1308_v27, 16  ;;  %v478_v58 = vrot.slane %v476_v37, 7 }
  0x18   : > { %v517_v36 = vsel %vm1398_vm4, 0, %v446_v29  ;;  %v520_v40 = vsel %vm1398_vm4, 0, %v467_v32  ;;  %v453_v42 = vor.u32 %v451_v30, %v450_v34  ;;  %v457_v59 = vrot.slane %v455_v38, 7 }
  0x19   : > { %v1438_v39 = vsel %vm1403_vm5, %v517_v36, 0  ;;  %v521_v41 = vsel %vm1398_vm4, 0, %v474_v33  ;;  %595 = vrot.lane.b32.xlu0 %v1432_v35, %s1341_s25  ;;  %v1449_v44 = vsel %vm1403_vm5, %v520_v40, 0  ;;  %v481_v1 = vor.u32 %v479_v46, %v478_v58  ;;  %v1311_v40 = vld [vmem:[%s1412_s23 + $0x1c] ss:$0 sps:$4 sm:$0xff]  }
  0x1a   : > { %v620_v43 = vrot.slane %v1438_v39, 1  ;;  %v1453_v45 = vsel %vm1403_vm5, %v521_v41, 0  ;;  %v1456_v47 = vrot.slane %v1449_v44, 1  ;;  %v547_v49 = vshrl.u32 %v1438_v39, 16 }
  0x1b   : > { %v1459_v48 = vrot.slane %v1453_v45, 1  ;;  %v549_v50 = vshll.u32 %v1438_v39, 16  ;;  %v568_v51 = vshrl.u32 %v1449_v44, 16  ;;  %v570_v52 = vshll.u32 %v1449_v44, 16 }
  0x1c   : > { %629 = vrot.lane.b32.xlu1 %v620_v43, %s1340_s24  ;;  %v518_v53 = vsel %vm1398_vm4, 0, %v453_v42  ;;  %v577_v54 = vshll.u32 %v1453_v45, 16  ;;  %v575_v0 = vshrl.u32 %v1453_v45, 16  ;;  %v458_v2 = vshll.u32 %v1309_v31, 16 }
  0x1d   : > { %v551_v56 = vrot.slane %v549_v50, 1  ;;  %v1474_v57 = vsel %vm1403_vm5, %v518_v53, 0  ;;  %635 = vrot.lane.b32.xlu0 %v1456_v47, %s1340_s24  ;;  %v572_v60 = vrot.slane %v570_v52, 1  ;;  %v483_v8 = vshrl.u32 %v1310_v55, 16 }
  0x1e   : > { %v554_v61 = vshrl.u32 %v1474_v57, 16  ;;  %v556_v62 = vshll.u32 %v1474_v57, 16  ;;  %v579_v7 = vrot.slane %v577_v54, 1  ;;  %v522_v9 = vsel %vm1398_vm4, 0, %v481_v1 }
  0x1f   : > { %v1480_v63 = vor.u32 %v551_v56, %v547_v49  ;;  %v1485_v3 = vor.u32 %v572_v60, %v568_v51  ;;  %v460_v10 = vor.u32 %v458_v2, %v457_v59  ;;  %v486_v11 = vshll.u32 %v1310_v55, 16  ;;  %v1313_v56 = vld [vmem:[%s1746_s3 + $0x8] sm:$0xff]   ;;  %v1314_v58 = vld [vmem:[%s1746_s3 + $0x10] ss:$0 sps:$4 sm:$0x33]  }
  0x20   : > { %637 = vrot.lane.b32.xlu1 %v1459_v48, %s1340_s24  ;;  %v558_v4 = vrot.slane %v556_v62, 1  ;;  %v1495_v13 = vsel %vm1403_vm5, %v522_v9, 0  ;;  %v485_v15 = vrot.slane %v483_v8, 7  ;;  %v1503_v20 = vor.u32 %v579_v7, %v575_v0 }
  0x21   : > { %597 = vrot.lane.b32.xlu0 %v1480_v63, %s1341_s25  ;;  %v582_v16 = vshrl.u32 %v1495_v13, 16  ;;  %v584_v17 = vshll.u32 %v1495_v13, 16  ;;  %v519_v18 = vsel %vm1398_vm4, 0, %v460_v10  ;;  %v1530_v33 = vrot.slane %v1474_v57, 1 }
  0x22   : > { %v1491_v12 = vor.u32 %v558_v4, %v554_v61  ;;  %v1507_v21 = vsel %vm1403_vm5, %v519_v18, 0  ;;  %v488_v22 = vor.u32 %v486_v11, %v485_v15  ;;  %v1539_v37 = vrot.slane %v1495_v13, 1 }
  0x23   : > { %v586_v23 = vrot.slane %v584_v17, 1  ;;  %v561_v24 = vshrl.u32 %v1507_v21, 16  ;;  %v563_v25 = vshll.u32 %v1507_v21, 16  ;;  %v1544_v38 = vrot.slane %v1507_v21, 1 }
  0x24   : > { %603 = vrot.lane.b32.xlu1 %v1485_v3, %s1341_s25  ;;  %v523_v26 = vsel %vm1398_vm4, 0, %v488_v22  ;;  %v490_v42 = vshrl.u32 %v1311_v40, 16  ;;  %v493_v49 = vshll.u32 %v1311_v40, 16  ;;  %v955_v59 = vsel %vm953_vm6, %v1314_v58, 0 }
  0x25   : > { %599 = vrot.lane.b32.xlu0 %v1491_v12, %s1341_s25  ;;  %v1515_v27 = vor.u32 %v586_v23, %v582_v16  ;;  %v565_v28 = vrot.slane %v563_v25, 1  ;;  %v1519_v29 = vsel %vm1403_vm5, %v523_v26, 0 }
  0x26   : > { %v589_v30 = vshrl.u32 %v1519_v29, 16  ;;  %v591_v31 = vshll.u32 %v1519_v29, 16  ;;  %v1552_v41 = vrot.slane %v1519_v29, 1  ;;  %v492_v46 = vrot.slane %v490_v42, 7 }
  0x27   : > { %v1525_v32 = vor.u32 %v565_v28, %v561_v24 }
  0x28   : > { %605 = vrot.lane.b32.xlu1 %v1503_v20, %s1341_s25  ;;  %v593_v34 = vrot.slane %v591_v31, 1  ;;  %v495_v50 = vor.u32 %v493_v49, %v492_v46 }
  0x29   : > { %607 = vrot.lane.b32.xlu0 %v1515_v27, %s1341_s25 }
  0x2a   : > { %v1534_v36 = vor.u32 %v593_v34, %v589_v30  ;;  %v524_v51 = vsel %vm1398_vm4, 0, %v495_v50 }
  0x2b   : > { %v1567_v52 = vsel %vm1403_vm5, %v524_v51, 0 }
  0x2c   : > { %601 = vrot.lane.b32.xlu1 %v1525_v32, %s1341_s25  ;;  %v663_v53 = vshll.u32 %v1567_v52, 16  ;;  %v661_v5 = vshrl.u32 %v1567_v52, 16  ;;  %v683_v55 = vrot.slane %v1567_v52, 1 }
  0x2d   : > { %631 = vrot.lane.b32.xlu0 %v1530_v33, %s1340_s24 }
  0x2e   : > { %v665_v6 = vrot.slane %v663_v53, 1 }
  0x30   : > { %609 = vrot.lane.b32.xlu1 %v1534_v36, %s1341_s25  ;;  %v666_v54 = vor.u32 %v665_v6, %v661_v5 }
  0x31   : > { %639 = vrot.lane.b32.xlu0 %v1539_v37, %s1340_s24 }
  0x34   : > { %633 = vrot.lane.b32.xlu1 %v1544_v38, %s1340_s24 }
  0x35   : > { %644 = vrot.lane.b32.xlu0 %v1438_v39, %s1342_s26 }
  0x38   : > { %641 = vrot.lane.b32.xlu1 %v1552_v41, %s1340_s24 }
  0x39   : > { %652 = vrot.lane.b32.xlu0 %v1453_v45, %s1342_s26 }
  0x3c   : > { %646 = vrot.lane.b32.xlu1 %v1474_v57, %s1342_s26 }
  0x3d   : > { %648 = vrot.lane.b32.xlu0 %v1507_v21, %s1342_s26 }
  0x40   : > { %654 = vrot.lane.b32.xlu1 %v1495_v13, %s1342_s26 }
  0x41   : > { %656 = vrot.lane.b32.xlu0 %v1519_v29, %s1342_s26 }
  0x44   : > { %650 = vrot.lane.b32.xlu1 %v1449_v44, %s1342_s26 }
  0x45   : > { %667 = vrot.lane.b32.xlu0 %v1480_v63, %s1343_s27 }
  0x48   : > { %658 = vrot.lane.b32.xlu1 %v1567_v52, %s1342_s26 }
  0x49   : > { %675 = vrot.lane.b32.xlu0 %v1503_v20, %s1343_s27 }
  0x4c   : > { %669 = vrot.lane.b32.xlu1 %v1491_v12, %s1343_s27 }
  0x4d   : > { %671 = vrot.lane.b32.xlu0 %v1525_v32, %s1343_s27 }
  0x50   : > { %677 = vrot.lane.b32.xlu1 %v1515_v27, %s1343_s27 }
  0x51   : > { %679 = vrot.lane.b32.xlu0 %v1534_v36, %s1343_s27 }
  0x54   : > { %673 = vrot.lane.b32.xlu1 %v1485_v3, %s1343_s27 }
  0x55   : > { %684 = vrot.lane.b32.xlu0 %v620_v43, %s1344_s28  ;;  %v1312_v43 = vld [vmem:[%s1746_s3] sm:$0xff]  }
  0x56   : > { %1249 = vmatprep.subr.bf16.mxu0 %v1312_v43  ;;  %1263 = vmatprep.subr.bf16.mxu1 %v1312_v43 }
  0x57   : > { %1250 = vmatpush3.bf16.msra.mxu0 %v1312_v43  ;;  %1266 = vmatpush3.bf16.msra.mxu1 %v1312_v43 }
  0x58   : > { %681 = vrot.lane.b32.xlu1 %v666_v54, %s1343_s27  ;;  %1251 = vmatprep.subr.bf16.mxu0 %v1313_v56 }
  0x59   : > { %692 = vrot.lane.b32.xlu0 %v1459_v48, %s1344_s28  ;;  %1264 = vmatprep.subr.bf16.mxu1 %v1313_v56 }
  0x5b   : > { %1252 = vmatpush3.bf16.msra.mxu0 %v1313_v56  ;;  %1267 = vmatpush3.bf16.msra.mxu1 %v1313_v56 }
  0x5c   : > { %686 = vrot.lane.b32.xlu1 %v1530_v33, %s1344_s28  ;;  %1269 = vmatprep.subr.msk.bf16.mxu0 %vm953_vm6, %v1314_v58 }
  0x5d   : > { %688 = vrot.lane.b32.xlu0 %v1544_v38, %s1344_s28  ;;  %1270 = vmatprep.subr.msk.bf16.mxu1 %vm953_vm6, %v1314_v58 }
  0x5f   : > { %1254 = vmatpush3.bf16.msra.mxu0 %v955_v59  ;;  %1268 = vmatpush3.bf16.msra.mxu1 %v955_v59 }
  0x60   : > { %694 = vrot.lane.b32.xlu1 %v1539_v37, %s1344_s28 }
  0x61   : > { %696 = vrot.lane.b32.xlu0 %v1552_v41, %s1344_s28 }
  0x64   : > { %690 = vrot.lane.b32.xlu1 %v1456_v47, %s1344_s28 }
  0x65   : > { %701 = vrot.lane.b32.xlu0 %v1474_v57, %s1345_s29 }
  0x68   : > { %698 = vrot.lane.b32.xlu1 %v683_v55, %s1344_s28 }
  0x69   : > { %709 = vrot.lane.b32.xlu0 %v1495_v13, %s1345_s29 }
  0x6c   : > { %703 = vrot.lane.b32.xlu1 %v1507_v21, %s1345_s29 }
  0x6d   : > { %705 = vrot.lane.b32.xlu0 %v1449_v44, %s1345_s29 }
  0x70   : > { %711 = vrot.lane.b32.xlu1 %v1519_v29, %s1345_s29 }
  0x71   : > { %713 = vrot.lane.b32.xlu0 %v1567_v52, %s1345_s29 }
  0x74   : > { %707 = vrot.lane.b32.xlu1 %v1453_v45, %s1345_s29 }
  0x75   : > { %724 = vrot.lane.b32.xlu0 %v1491_v12, %s1346_s30 }
  0x78   : > { %715 = vrot.lane.b32.xlu1 %v1421_v14, %s1345_s29 }
  0x79   : > { %732 = vrot.lane.b32.xlu0 %v1515_v27, %s1346_s30 }
  0x7c   : > { %726 = vrot.lane.b32.xlu1 %v1525_v32, %s1346_s30 }
  0x7d   : > { %728 = vrot.lane.b32.xlu0 %v1485_v3, %s1346_s30 }
  0x80   : > { %734 = vrot.lane.b32.xlu1 %v1534_v36, %s1346_s30 }
  0x81   : > { %736 = vrot.lane.b32.xlu0 %v666_v54, %s1346_s30 }
  0x84   : > { %730 = vrot.lane.b32.xlu1 %v1503_v20, %s1346_s30 }
  0x85   : > { %741 = vrot.lane.b32.xlu0 %v1530_v33, %s1347_s12 }
  0x87   : > { %v628_v60 = vpop.permute.xlu0 %627 }
  0x88   : > { %738 = vrot.lane.b32.xlu1 %v1432_v35, %s1346_s30 }
  0x89   : > { %749 = vrot.lane.b32.xlu0 %v1539_v37, %s1347_s12 }
  0x8b   : > { %v596_v61 = vpop.permute.xlu0 %595 }
  0x8c   : > { %743 = vrot.lane.b32.xlu1 %v1544_v38, %s1347_s12  ;;  %v759_v62 = vsel %vm757_vm7, %v1421_v14, %v596_v61 }
  0x8d   : > { %745 = vrot.lane.b32.xlu0 %v1456_v47, %s1347_s12  ;;  %v776_v0 = vsel %vm774_vm8, %v759_v62, %v628_v60 }
  0x8e   : > { %v630_v63 = vpop.permute.xlu1 %629 }
  0x8f   : > { %v636_v1 = vpop.permute.xlu0 %635 }
  0x90   : > { %751 = vrot.lane.b32.xlu1 %v1552_v41, %s1347_s12 }
  0x91   : > { %753 = vrot.lane.b32.xlu0 %v683_v55, %s1347_s12 }
  0x92   : > { %v638_v35 = vpop.permute.xlu1 %637 }
  0x93   : > { %v598_v2 = vpop.permute.xlu0 %597 }
  0x94   : > { %747 = vrot.lane.b32.xlu1 %v1459_v48, %s1347_s12  ;;  %v761_v3 = vsel %vm757_vm7, %v1438_v39, %v598_v2 }
  0x95   : > { %v778_v7 = vsel %vm774_vm8, %v761_v3, %v630_v63 }
  0x96   : > { %v604_v4 = vpop.permute.xlu1 %603 }
  0x97   : > { %v767_v8 = vsel %vm757_vm7, %v1449_v44, %v604_v4  ;;  %v600_v47 = vpop.permute.xlu0 %599 }
  0x98   : > { %755 = vrot.lane.b32.xlu1 %v619_v19, %s1347_s12  ;;  %v784_v9 = vsel %vm774_vm8, %v767_v8, %v636_v1  ;;  %v763_v15 = vsel %vm757_vm7, %v1474_v57, %v600_v47 }
  0x9a   : > { %v606_v10 = vpop.permute.xlu1 %605 }
  0x9b   : > { %v769_v48 = vsel %vm757_vm7, %v1453_v45, %v606_v10  ;;  %v608_v11 = vpop.permute.xlu0 %607 }
  0x9c   : > { %v786_v12 = vsel %vm774_vm8, %v769_v48, %v638_v35  ;;  %v771_v14 = vsel %vm757_vm7, %v1495_v13, %v608_v11 }
  0x9e   : > { %v602_v39 = vpop.permute.xlu1 %601 }
  0x9f   : > { %v632_v16 = vpop.permute.xlu0 %631  ;;  %v765_v45 = vsel %vm757_vm7, %v1507_v21, %v602_v39 }
  0xa0   : > { %v780_v44 = vsel %vm774_vm8, %v763_v15, %v632_v16 }
  0xa2   : > { %v610_v17 = vpop.permute.xlu1 %609 }
  0xa3   : > { %v640_v19 = vpop.permute.xlu0 %639  ;;  %v773_v24 = vsel %vm757_vm7, %v1519_v29, %v610_v17 }
  0xa4   : > { %v788_v18 = vsel %vm774_vm8, %v771_v14, %v640_v19 }
  0xa6   : > { %v634_v20 = vpop.permute.xlu1 %633 }
  0xa7   : > { %v782_v22 = vsel %vm774_vm8, %v765_v45, %v634_v20  ;;  %v645_v23 = vpop.permute.xlu0 %644 }
  0xa8   : > { %v793_v57 = vsel %vm791_vm9, %v776_v0, %v645_v23 }
  0xaa   : > { %v642_v25 = vpop.permute.xlu1 %641 }
  0xab   : > { %v790_v26 = vsel %vm774_vm8, %v773_v24, %v642_v25  ;;  %v653_v13 = vpop.permute.xlu0 %652 }
  0xac   : > { %v1646_v27 = vsel %vm791_vm9, %v784_v9, %v653_v13 }
  0xae   : > { %v647_v28 = vpop.permute.xlu1 %646 }
  0xaf   : > { %v795_v21 = vsel %vm791_vm9, %v778_v7, %v647_v28  ;;  %v649_v30 = vpop.permute.xlu0 %648 }
  0xb0   : > { %v1650_v31 = vsel %vm791_vm9, %v780_v44, %v649_v30 }
  0xb2   : > { %v655_v32 = vpop.permute.xlu1 %654 }
  0xb3   : > { %v803_v33 = vsel %vm791_vm9, %v786_v12, %v655_v32  ;;  %v657_v34 = vpop.permute.xlu0 %656 }
  0xb4   : > { %v1654_v29 = vsel %vm791_vm9, %v788_v18, %v657_v34 }
  0xb6   : > { %v651_v36 = vpop.permute.xlu1 %650 }
  0xb7   : > { %v1657_v37 = vsel %vm791_vm9, %v782_v22, %v651_v36  ;;  %v668_v38 = vpop.permute.xlu0 %667 }
  0xb8   : > { %v810_v12 = vsel %vm808_vm10, %v793_v57, %v668_v38 }
  0xba   : > { %v659_v40 = vpop.permute.xlu1 %658 }
  0xbb   : > { %v1660_v41 = vsel %vm791_vm9, %v790_v26, %v659_v40  ;;  %v676_v42 = vpop.permute.xlu0 %675 }
  0xbc   : > { %v818_v20 = vsel %vm808_vm10, %v1646_v27, %v676_v42 }
  0xbe   : > { %v670_v46 = vpop.permute.xlu1 %669 }
  0xbf   : > { %v672_v49 = vpop.permute.xlu0 %671  ;;  %v812_v39 = vsel %vm808_vm10, %v795_v21, %v670_v46 }
  0xc2   : > { %v678_v50 = vpop.permute.xlu1 %677 }
  0xc3   : > { %v1662_v51 = vpop.permute.xlu0 %679  ;;  %v820_v22 = vsel %vm808_vm10, %v803_v33, %v678_v50  ;;  %v814_v33 = vsel %vm808_vm10, %v1650_v31, %v672_v49 }
  0xc6   : > { %v674_v52 = vpop.permute.xlu1 %673 }
  0xc7   : > { %v685_v53 = vpop.permute.xlu0 %684  ;;  %v816_v34 = vsel %vm808_vm10, %v1657_v37, %v674_v52  ;;  %v822_v37 = vsel %vm808_vm10, %v1654_v29, %v1662_v51 }
  0xc8   : > { %v827_v15 = vsel %vm825_vm11, %v810_v12, %v685_v53 }
  0xca   : > { %v1664_v5 = vpop.permute.xlu1 %681 }
  0xcb   : > { %v693_v6 = vpop.permute.xlu0 %692  ;;  %v824_v52 = vsel %vm808_vm10, %v1660_v41, %v1664_v5 }
  0xcc   : > { %v835_v24 = vsel %vm825_vm11, %v818_v20, %v693_v6 }
  0xce   : > { %v687_v54 = vpop.permute.xlu1 %686 }
  0xcf   : > { %v689_v55 = vpop.permute.xlu0 %688  ;;  %v829_v16 = vsel %vm825_vm11, %v812_v39, %v687_v54 }
  0xd0   : > { %v831_v40 = vsel %vm825_vm11, %v814_v33, %v689_v55 }
  0xd2   : > { %v695_v43 = vpop.permute.xlu1 %694 }
  0xd3   : > { %v1666_v56 = vpop.permute.xlu0 %696  ;;  %v837_v25 = vsel %vm825_vm11, %v820_v22, %v695_v43 }
  0xd4   : > { %v839_v43 = vsel %vm825_vm11, %v822_v37, %v1666_v56 }
  0xd6   : > { %v691_v58 = vpop.permute.xlu1 %690 }
  0xd7   : > { %v702_v59 = vpop.permute.xlu0 %701  ;;  %v833_v42 = vsel %vm825_vm11, %v816_v34, %v691_v58 }
  0xd8   : > { %v844_v17 = vsel %vm842_vm12, %v827_v15, %v702_v59 }
  0xda   : > { %v1668_v60 = vpop.permute.xlu1 %698 }
  0xdb   : > { %v710_v61 = vpop.permute.xlu0 %709  ;;  %v841_v58 = vsel %vm825_vm11, %v824_v52, %v1668_v60  ;;  %v1200_v60 = vld [vmem:[%s1747_s4] ss:$0 sm:$0xff] }
  0xdc   : > { %v852_v13 = vsel %vm842_vm12, %v835_v24, %v710_v61 }
  0xde   : > { %v704_v62 = vpop.permute.xlu1 %703 }
  0xdf   : > { %v706_v63 = vpop.permute.xlu0 %705  ;;  %v846_v14 = vsel %vm842_vm12, %v829_v16, %v704_v62 }
  0xe0   : > { %v848_v50 = vsel %vm842_vm12, %v831_v40, %v706_v63 }
  0xe2   : > { %v712_v0 = vpop.permute.xlu1 %711 }
  0xe3   : > { %v1670_v1 = vpop.permute.xlu0 %713  ;;  %v854_v28 = vsel %vm842_vm12, %v837_v25, %v712_v0 }
  0xe4   : > { %v856_v62 = vsel %vm842_vm12, %v839_v43, %v1670_v1 }
  0xe6   : > { %v708_v35 = vpop.permute.xlu1 %707 }
  0xe7   : > { %v725_v2 = vpop.permute.xlu0 %724  ;;  %v850_v53 = vsel %vm842_vm12, %v833_v42, %v708_v35 }
  0xe8   : > { %v861_v19 = vsel %vm859_vm13, %v844_v17, %v725_v2 }
  0xea   : > { %v716_v3 = vpop.permute.xlu1 %715 }
  0xeb   : > { %v733_v4 = vpop.permute.xlu0 %732  ;;  %v858_v29 = vsel %vm842_vm12, %v841_v58, %v716_v3 }
  0xec   : > { %v869_v21 = vsel %vm859_vm13, %v852_v13, %v733_v4 }
  0xee   : > { %v727_v7 = vpop.permute.xlu1 %726 }
  0xef   : > { %v729_v8 = vpop.permute.xlu0 %728  ;;  %v863_v18 = vsel %vm859_vm13, %v846_v14, %v727_v7 }
  0xf0   : > { %v865_v6 = vsel %vm859_vm13, %v848_v50, %v729_v8 }
  0xf2   : > { %v735_v47 = vpop.permute.xlu1 %734 }
  0xf3   : > { %v737_v9 = vpop.permute.xlu0 %736  ;;  %v871_v30 = vsel %vm859_vm13, %v854_v28, %v735_v47 }
  0xf4   : > { %v873_v51 = vsel %vm859_vm13, %v856_v62, %v737_v9 }
  0xf6   : > { %v731_v10 = vpop.permute.xlu1 %730 }
  0xf7   : > { %v742_v48 = vpop.permute.xlu0 %741  ;;  %v867_v31 = vsel %vm859_vm13, %v850_v53, %v731_v10 }
  0xf8   : > { %v878_v23 = vsel %vm876_vm14, %v861_v19, %v742_v48 }
  0xfa   : > { %v739_v11 = vpop.permute.xlu1 %738 }
  0xfb   : > { %v750_v44 = vpop.permute.xlu0 %749  ;;  %v875_v41 = vsel %vm859_vm13, %v858_v29, %v739_v11 }
  0xfc   : > { %v886_v36 = vsel %vm876_vm14, %v869_v21, %v750_v44 }
  0xfe   : > { %v744_v45 = vpop.permute.xlu1 %743 }
  0xff   : > { %v880_v57 = vsel %vm876_vm14, %v863_v18, %v744_v45  ;;  %v746_v27 = vpop.permute.xlu0 %745 }
 0x100   : > { %v1201_v26 = vcombine.low %v878_v23, %v880_v57  ;;  %v882_v54 = vsel %vm876_vm14, %v865_v6, %v746_v27 }
 0x102   : > { %v752_v32 = vpop.permute.xlu1 %751  ;;  %1255 = vmatprep.mubr.msk.bf16.mxu0 %vm940_vm15, %v1201_v26 }
 0x103   : > { %v888_v38 = vsel %vm876_vm14, %v871_v30, %v752_v32  ;;  %v754_v59 = vpop.permute.xlu0 %753 }
 0x104   : > { %v1203_v46 = vcombine.low %v886_v36, %v888_v38  ;;  %v890_v63 = vsel %vm876_vm14, %v873_v51, %v754_v59 }
 0x106   : > { %v748_v49 = vpop.permute.xlu1 %747  ;;  %1259 = vmatprep.mubr.msk.bf16.mxu1 %vm940_vm15, %v1203_v46 }
 0x107   : > { %v884_v55 = vsel %vm876_vm14, %v867_v31, %v748_v49 }
 0x108   : > { %v1202_v61 = vcombine.low %v882_v54, %v884_v55 }
 0x10a   : > { %v756_v5 = vpop.permute.xlu1 %755  ;;  %1256 = vmatmul.mubr.msk.bf16.vlgmr.msra.gmra.mrb[0].mxu0 %vm940_vm15, %v1202_v61 }
 0x10b   : > { %v892_v56 = vsel %vm876_vm14, %v875_v41, %v756_v5 }
 0x10c   : > { %v1204_v0 = vcombine.low %v890_v63, %v892_v56 }
 0x10e   : > { %1260 = vmatmul.mubr.msk.bf16.vlgmr.msra.gmra.mrb[0].mxu1 %vm940_vm15, %v1204_v0 }
 0x1dd   : > { %v1257_v1 = vpop.f32.mrb[0].mxu0 }
 0x1de   : > { %v1000_v35 = vadd.f32 %v1257_v1, %v1200_v60  ;;  %v991_v2 = vpop.f32.mrb[1].mxu0 }
 0x1df   : > { %v992_v3 = vadd.f32 %v1200_v60, %v991_v2  ;;  %v1258_v4 = vpop.f32.mrb[2].mxu0 }
 0x1e0   : > { %v1024_v7 = vmul.f32 0.01, %v1000_v35  ;;  %v1003_v8 = vadd.f32 %v1258_v4, %v1200_v60  ;;  %v994_v47 = vpop.f32.mrb[3].mxu0 }
 0x1e1   : > { %v1022_v9 = vmul.f32 0.01, %v992_v3  ;;  %v995_v10 = vadd.f32 %v1200_v60, %v994_v47  ;;  %v1261_v48 = vpop.f32.mrb[0].mxu1 }
 0x1e2   : > { %v1025_v11 = vmul.f32 0.01, %v1003_v8  ;;  %v1016_v12 = vadd.f32 %v1261_v48, %v1200_v60  ;;  %v1007_v39 = vpop.f32.mrb[1].mxu1  ;;  %v1032_v17 = vmax.f32 %v1000_v35, %v1024_v7 }
 0x1e3   : > { %v1023_v15 = vmul.f32 0.01, %v995_v10  ;;  %v1008_v16 = vadd.f32 %v1200_v60, %v1007_v39  ;;  %v1262_v44 = vpop.f32.mrb[2].mxu1  ;;  %v1030_v20 = vmax.f32 %v992_v3, %v1022_v9 }
 0x1e4   : > { %v1033_v14 = vmax.f32 %v1003_v8, %v1025_v11  ;;  %v1028_v19 = vmul.f32 0.01, %v1016_v12  ;;  %v1019_v18 = vadd.f32 %v1262_v44, %v1200_v60  ;;  %v1010_v45 = vpop.f32.mrb[3].mxu1 }
 0x1e5   : > { %v1031_v22 = vmax.f32 %v995_v10, %v1023_v15  ;;  %v1026_v23 = vmul.f32 0.01, %v1008_v16  ;;  %v1011_v57 = vadd.f32 %v1200_v60, %v1010_v45 }
 0x1e6   : > { %v1227_v24 = vpack.c.bf16 %v1033_v14, %v1032_v17  ;;  %v1029_v25 = vmul.f32 0.01, %v1019_v18  ;;  %v1036_v28 = vmax.f32 %v1016_v12, %v1028_v19 }
 0x1e7   : > { %v1222_v26 = vpack.c.bf16 %v1031_v22, %v1030_v20  ;;  %v1027_v13 = vmul.f32 0.01, %v1011_v57  ;;  %v1034_v30 = vmax.f32 %v1008_v16, %v1026_v23 }
 0x1e8   : > { %1239 = vst [vmem:[%s380_s17 + $0x8] sm:$0xff] %v1227_v24   ;;  %v1037_v21 = vmax.f32 %v1019_v18, %v1029_v25 }
 0x1e9   : > { %1223 = vst [vmem:[%s380_s17] sm:$0xff] %v1222_v26   ;;  %v1035_v27 = vmax.f32 %v1011_v57, %v1027_v13 }
 0x1ea   : > { %v1237_v32 = vpack.c.bf16 %v1037_v21, %v1036_v28 }
 0x1eb   : > { %v1232_v33 = vpack.c.bf16 %v1035_v27, %v1034_v30 }
 0x1ec   : > { %1241 = vst [vmem:[%s380_s17 + $0x18] sm:$0xff] %v1237_v32  }
 0x1ed   : > { %1240 = vst [vmem:[%s380_s17 + $0x10] sm:$0xff] %v1232_v33  }
 0x1ee PF: > { %s15_s0 = sadd.s32 1, %s1337_s0   ;;  %s1753_s18 = smov %s1333_s19 }
 0x1ef   : > { %p12_p5 = scmp.ge.s32.totalorder %s15_s0, 4   ;;  %s1754_s19 = smov %s1756_s2 }
 0x1f1   :  { %14 = sbr.rel (!%p12_p5) target bundleno = 2 (0x2), region = 76 }

// kernel: down_forward.5
= control target key start
LH: loop header
LB: loop body
LE: loop exit
PB: predicated region body
PF: predicated region fallthrough
CT: control target
= control target key end

     0   :  { %s2270_s18 = smov 0   ;;  %s2272_s19 = smov 0   ;;  %s2754_s0 = inlined_call_operand.vmem [shape: bf16[2,8,8,128], index: 0, kind: input, shape index: {}, may-alias: {0,1,2}]   ;;  %s2755_s1 = inlined_call_operand.vmem [shape: bf16[2,8,8,128], index: 1, kind: input, shape index: {}, may-alias: {0,1,2}]   ;;  %s2756_s2 = inlined_call_operand.vmem [shape: bf16[2,8,8,128], index: 2, kind: input, shape index: {}, may-alias: {0,1,2}]   ;;  %s2757_s3 = inlined_call_operand.vmem [shape: bf16[1152,128], index: 3, kind: input, shape index: {}]   ;;  %s2758_s4 = inlined_call_operand.vmem [shape: f32[1,128], index: 4, kind: input, shape index: {}]   ;;  %s2759_s5 = inlined_call_operand.vmem [shape: f32[2,8,8,128], index: 5, kind: output, shape index: {}]  }
   0x1   :  { %s2274_s0 = smov 0  }
   0x2 LB: > { %s27_s2 = sadd.s32 1, %s2233_s19  ;;  %p1772_p0 = scmp.ge.s32.totalorder %s2237_s0, 1  ;;  %s2237_s0 = sphi %s2274_s0, %s15_s0   ;;  %s2233_s19 = sphi %s2272_s19, %s2765_s19   ;;  %s2229_s18 = sphi %s2270_s18, %s2764_s18  }
   0x3   : > { %p29_p1 = scmp.ge.s32.totalorder %s27_s2, 2  ;;  %p270_p2 = scmp.lt.s32.totalorder %s2237_s0, 3 }
   0x5   : > { %s2767_s2 = smov (%p29_p1, %s27_s2), 0  ;;  %p271_p3 = pnand %p1772_p0, %p270_p2 }
   0x6   : > { %v2135_v0 = vld [vmem:[%s2757_s3 + $0x40] sm:$0xff] (!%p271_p3)   ;;  %v2139_v4 = vld [vmem:[%s2757_s3 + $0x48] sm:$0xff] (!%p271_p3)   ;;  %v2143_v8 = vld [vmem:[%s2757_s3 + $0x50] sm:$0xff] (!%p271_p3)   ;;  %p347_p4 = scmp.lt.s32.totalorder (!%p271_p3), %s2229_s18, 1  ;;  %v2239_v20 = vmov (!%p271_p3), 0   ;;  %vm513_vm0 = vcmask (!%p271_p3), 1040384  }
   0x7   : > { %274 = sbr.rel (%p271_p3) target bundleno = 333 (0x14d), region = 40  ;;  %v2136_v1 = vld [vmem:[%s2757_s3 + $0xc0] sm:$0xff] (!%p271_p3)   ;;  %1898 = vmatprep.subr.bf16.mxu0 (!%p271_p3), %v2135_v0  ;;  %v2140_v5 = vld [vmem:[%s2757_s3 + $0xc8] sm:$0xff] (!%p271_p3)   ;;  %v2144_v9 = vld [vmem:[%s2757_s3 + $0xd0] sm:$0xff] (!%p271_p3)   ;;  %v1781_v21 = vcombine.low (!%p271_p3), %v2239_v20, %v2239_v20  ;;  %vm526_vm1 = vcmask (!%p271_p3), 1044480  }
   0x8   : > { %v2137_v2 = vld [vmem:[%s2757_s3] sm:$0xff] (!%p271_p3)   ;;  %1938 = vmatprep.subr.bf16.mxu1 (!%p271_p3), %v2136_v1  ;;  %v2141_v6 = vld [vmem:[%s2757_s3 + $0x8] sm:$0xff] (!%p271_p3)   ;;  %v2145_v10 = vld [vmem:[%s2757_s3 + $0x10] sm:$0xff] (!%p271_p3)   ;;  %vm514_vm2 = vsmask.f32 (!%p271_p3), 256 }
   0x9   : > { %v2138_v3 = vld [vmem:[%s2757_s3 + $0x80] sm:$0xff] (!%p271_p3)   ;;  %1899 = vmatpush3.bf16.msra.mxu0 (!%p271_p3), %v2137_v2  ;;  %v2142_v7 = vld [vmem:[%s2757_s3 + $0x88] sm:$0xff] (!%p271_p3)   ;;  %v2146_v11 = vld [vmem:[%s2757_s3 + $0x90] sm:$0xff] (!%p271_p3)   ;;  %v434_v26 = vshrl.u32 (!%p271_p3), %v1781_v21, 16  ;;  %v437_v30 = vshll.u32 (!%p271_p3), %v1781_v21, 16 }
   0xa   : > { %1939 = vmatpush3.bf16.msra.mxu1 (!%p271_p3), %v2138_v3  ;;  %1900 = vmatprep.subr.bf16.mxu0 (!%p271_p3), %v2139_v4  ;;  %v2147_v12 = vld [vmem:[%s2757_s3 + $0x58] sm:$0xff] (!%p271_p3)   ;;  %v2151_v16 = vld [vmem:[%s2757_s3 + $0x60] sm:$0xff] (!%p271_p3)   ;;  %v2155_v22 = vld [vmem:[%s2757_s3 + $0x68] sm:$0xff] (!%p271_p3)   ;;  %vm527_vm3 = vsmask.f32 (!%p271_p3), 4352 }
   0xb   : > { %1940 = vmatprep.subr.bf16.mxu1 (!%p271_p3), %v2140_v5  ;;  %v2148_v13 = vld [vmem:[%s2757_s3 + $0xd8] sm:$0xff] (!%p271_p3)   ;;  %v2152_v17 = vld [vmem:[%s2757_s3 + $0xe0] sm:$0xff] (!%p271_p3)   ;;  %v2156_v23 = vld [vmem:[%s2757_s3 + $0xe8] sm:$0xff] (!%p271_p3)   ;;  %v436_v32 = vrot.slane (!%p271_p3), %v434_v26, 7 }
   0xc   : > { %v2149_v14 = vld [vmem:[%s2757_s3 + $0x18] sm:$0xff] (!%p271_p3)   ;;  %v2153_v18 = vld [vmem:[%s2757_s3 + $0x20] sm:$0xff] (!%p271_p3)   ;;  %v2157_v24 = vld [vmem:[%s2757_s3 + $0x28] sm:$0xff] (!%p271_p3)  }
   0xd   : > { %1901 = vmatpush3.bf16.msra.mxu0 (!%p271_p3), %v2141_v6  ;;  %v2150_v15 = vld [vmem:[%s2757_s3 + $0x98] sm:$0xff] (!%p271_p3)   ;;  %v2154_v19 = vld [vmem:[%s2757_s3 + $0xa0] sm:$0xff] (!%p271_p3)   ;;  %v2158_v25 = vld [vmem:[%s2757_s3 + $0xa8] sm:$0xff] (!%p271_p3)   ;;  %v439_v37 = vor.u32 (!%p271_p3), %v437_v30, %v436_v32 }
   0xe   : > { %1941 = vmatpush3.bf16.msra.mxu1 %v2142_v7  ;;  %1902 = vmatprep.subr.bf16.mxu0 %v2143_v8  ;;  %s2769_s18 = smov (!%p347_p4, %s2229_s18), 1  ;;  %v2159_v27 = vld [vmem:[%s2757_s3 + $0x70] sm:$0xff]   ;;  %v2163_v33 = vld [vmem:[%s2757_s3 + $0x78] sm:$0xff]   ;;  %vm2398_vm4 = vmand %vm513_vm0, %vm514_vm2 }
   0xf   : > { %1942 = vmatprep.subr.bf16.mxu1 %v2144_v9  ;;  %v2160_v28 = vld [vmem:[%s2757_s3 + $0xf0] sm:$0xff]   ;;  %s1894_s26 = sshll.u32 %s2769_s18, 5  ;;  %v2164_v34 = vld [vmem:[%s2757_s3 + $0xf8] sm:$0xff]   ;;  %v516_v45 = vsel %vm2398_vm4, 0, %v439_v37  ;;  %vm2404_vm5 = vmand %vm526_vm1, %vm527_vm3  ;;  %s1897_s8 = sshll.u32 %s2769_s18, 6 }
  0x10   : > { %v2161_v29 = vld [vmem:[%s2757_s3 + $0x30] sm:$0xff]   ;;  %s2388_s12 = scalar_lea.vmem %s2755_s1, %s1894_s26  ;;  %v2165_v35 = vld [vmem:[%s2757_s3 + $0x38] sm:$0xff]   ;;  %v2169_v47 = vld [vmem:[%s2757_s3 + $0x140] sm:$0xff]   ;;  %v2413_v49 = vsel %vm2404_vm5, %v516_v45, 0  ;;  %s2734_s11 = scalar_lea.vmem %s2759_s5, %s1897_s8 }
  0x11   : > { %1903 = vmatpush3.bf16.msra.mxu0 %v2145_v10  ;;  %v2162_v31 = vld [vmem:[%s2757_s3 + $0xb0] sm:$0xff]   ;;  %v2166_v36 = vld [vmem:[%s2757_s3 + $0xb8] sm:$0xff]   ;;  %v2167_v38 = vld [vmem:[%s2388_s12] ss:$0 sps:$4 sm:$0xff]   ;;  %v542_v52 = vshll.u32 %v2413_v49, 16  ;;  %v540_v55 = vshrl.u32 %v2413_v49, 16 }
  0x12   : > { %1943 = vmatpush3.bf16.msra.mxu1 %v2146_v11  ;;  %1904 = vmatprep.subr.bf16.mxu0 %v2147_v12  ;;  %v2168_v39 = vld [vmem:[%s2388_s12 + $0x4] ss:$0 sps:$4 sm:$0xff]   ;;  %v441_v40 = vshrl.u32 %v2167_v38, 16  ;;  %v444_v41 = vshll.u32 %v2167_v38, 16  ;;  %v603_v60 = vrot.slane %v2413_v49, 1  ;;  %v2174_v7 = vld [vmem:[%s2757_s3 + $0x1c8] sm:$0xff]  }
  0x13   : > { %1944 = vmatprep.subr.bf16.mxu1 %v2148_v13  ;;  %v448_v43 = vshrl.u32 %v2168_v39, 16  ;;  %v451_v44 = vshll.u32 %v2168_v39, 16  ;;  %v2170_v50 = vld [vmem:[%s2757_s3 + $0x1c0] sm:$0xff]   ;;  %v544_v57 = vrot.slane %v542_v52, 1  ;;  %v2177_v8 = vld [vmem:[%s2388_s12 + $0x8] ss:$0 sps:$4 sm:$0xff]  }
  0x14   : > { %v443_v48 = vrot.slane %v441_v40, 7  ;;  %v2172_v4 = vld [vmem:[%s2757_s3 + $0x180] sm:$0xff]   ;;  %v2176_v11 = vld [vmem:[%s2757_s3 + $0x188] sm:$0xff]   ;;  %v2180_v21 = vld [vmem:[%s2757_s3 + $0x1d0] sm:$0xff]  }
  0x15   : > { %1905 = vmatpush3.bf16.msra.mxu0 %v2149_v14  ;;  %v450_v51 = vrot.slane %v448_v43, 7  ;;  %v2438_v2 = vor.u32 %v544_v57, %v540_v55  ;;  %v2171_v10 = vld [vmem:[%s2757_s3 + $0x100] sm:$0xff]   ;;  %v2178_v12 = vld [vmem:[%s2388_s12 + $0xc] ss:$0 sps:$4 sm:$0xff]   ;;  %v2179_v26 = vld [vmem:[%s2757_s3 + $0x150] sm:$0xff]  }
  0x16   : > { %1945 = vmatpush3.bf16.msra.mxu1 %v2150_v15  ;;  %1906 = vmatprep.subr.bf16.mxu0 %v2151_v16  ;;  %v446_v53 = vor.u32 %v444_v41, %v443_v48  ;;  %v2173_v14 = vld [vmem:[%s2757_s3 + $0x148] sm:$0xff]   ;;  %v455_v15 = vshrl.u32 %v2177_v8, 16  ;;  %v458_v16 = vshll.u32 %v2177_v8, 16  ;;  %v2181_v38 = vld [vmem:[%s2757_s3 + $0x110] sm:$0xff]   ;;  %v2183_v43 = vld [vmem:[%s2757_s3 + $0x158] sm:$0xff]  }
  0x17   : > { %1946 = vmatprep.subr.bf16.mxu1 %v2152_v17  ;;  %v453_v54 = vor.u32 %v451_v44, %v450_v51  ;;  %v2187_v39 = vld [vmem:[%s2388_s12 + $0x10] ss:$0 sps:$4 sm:$0xff]   ;;  %v2186_v44 = vld [vmem:[%s2757_s3 + $0x198] sm:$0xff]   ;;  %v2188_v51 = vld [vmem:[%s2388_s12 + $0x14] ss:$0 sps:$4 sm:$0xff]  }
  0x18   : > { %v517_v56 = vsel %vm2398_vm4, 0, %v446_v53  ;;  %v457_v20 = vrot.slane %v455_v15, 7  ;;  %v469_v48 = vshrl.u32 %v2187_v39, 16  ;;  %v2190_v52 = vld [vmem:[%s2757_s3 + $0x1e0] sm:$0xff]   ;;  %v2185_v57 = vld [vmem:[%s2757_s3 + $0x118] sm:$0xff]   ;;  %v2194_v8 = vld [vmem:[%s2757_s3 + $0x1e8] sm:$0xff]  }
  0x19   : > { %1907 = vmatpush3.bf16.msra.mxu0 %v2153_v18  ;;  %v518_v58 = vsel %vm2398_vm4, 0, %v453_v54  ;;  %v2426_v59 = vsel %vm2404_vm5, %v517_v56, 0  ;;  %v462_v18 = vshrl.u32 %v2178_v12, 16 }
  0x1a   : > { %1947 = vmatpush3.bf16.msra.mxu1 %v2154_v19  ;;  %1908 = vmatprep.subr.bf16.mxu0 %v2155_v22  ;;  %v2431_v61 = vsel %vm2404_vm5, %v518_v58, 0  ;;  %v547_v62 = vshrl.u32 %v2426_v59, 16  ;;  %v549_v63 = vshll.u32 %v2426_v59, 16  ;;  %v604_v1 = vrot.slane %v2426_v59, 1  ;;  %v2175_v22 = vld [vmem:[%s2757_s3 + $0x108] sm:$0xff]  }
  0x1b   : > { %1948 = vmatprep.subr.bf16.mxu1 %v2156_v23  ;;  %v1795_v0 = vcombine.low %v2426_v59, %v2431_v61  ;;  %v556_v5 = vshll.u32 %v2431_v61, 16  ;;  %v1792_v13 = vcombine.low %v2413_v49, %v2426_v59  ;;  %v465_v19 = vshll.u32 %v2178_v12, 16 }
  0x1c   : > { %v551_v3 = vrot.slane %v549_v63, 1  ;;  %v1794_v6 = vcombine.low %v603_v60, %v604_v1  ;;  %v464_v23 = vrot.slane %v462_v18, 7  ;;  %v471_v58 = vrot.slane %v469_v48, 7 }
  0x1d   : > { %1909 = vmatpush3.bf16.msra.mxu0 %v2157_v24  ;;  %1393 = vmatprep.mubr.bf16.mxu1 %v1795_v0  ;;  %v554_v24 = vshrl.u32 %v2431_v61, 16  ;;  %v479_v63 = vshll.u32 %v2188_v51, 16  ;;  %v2192_v0 = vld [vmem:[%s2757_s3 + $0x1a0] sm:$0xff]  }
  0x1e   : > { %1949 = vmatpush3.bf16.msra.mxu1 %v2158_v25  ;;  %1910 = vmatprep.subr.bf16.mxu0 %v2159_v27  ;;  %v2452_v9 = vor.u32 %v551_v3, %v547_v62  ;;  %v460_v25 = vor.u32 %v458_v16, %v457_v20  ;;  %v558_v27 = vrot.slane %v556_v5, 1  ;;  %v476_v62 = vshrl.u32 %v2188_v51, 16  ;;  %v2202_v51 = vld [vmem:[%s2757_s3 + $0x1b0] sm:$0xff]  }
  0x1f   : > { %1950 = vmatprep.subr.bf16.mxu1 %v2160_v28  ;;  %v467_v28 = vor.u32 %v465_v19, %v464_v23  ;;  %v2193_v19 = vld [vmem:[%s2757_s3 + $0x168] sm:$0xff]  }
  0x20   : > { %v1793_v17 = vcombine.low %v2438_v2, %v2452_v9  ;;  %v519_v30 = vsel %vm2398_vm4, 0, %v460_v25  ;;  %v2512_v45 = vor.u32 %v558_v27, %v554_v24  ;;  %v2196_v27 = vld [vmem:[%s2757_s3 + $0x1a8] sm:$0xff]  }
  0x21   : > { %1911 = vmatpush3.bf16.msra.mxu0 %v2161_v29  ;;  %v2182_v29 = vld [vmem:[%s2757_s3 + $0x190] sm:$0xff]   ;;  %v2488_v32 = vsel %vm2404_vm5, %v519_v30, 0 }
  0x22   : > { %1951 = vmatpush3.bf16.msra.mxu1 %v2162_v31  ;;  %1912 = vmatprep.subr.bf16.mxu0 %v2163_v33  ;;  %v2184_v31 = vld [vmem:[%s2757_s3 + $0x1d8] sm:$0xff]   ;;  %v520_v33 = vsel %vm2398_vm4, 0, %v467_v28  ;;  %v606_v41 = vrot.slane %v2488_v32, 1  ;;  %v2536_v3 = vcombine.low %v2431_v61, %v2488_v32 }
  0x23   : > { %1952 = vmatprep.subr.bf16.mxu1 %v2164_v34  ;;  %1328 = vmatprep.mubr.bf16.mxu0 %v1793_v17  ;;  %v605_v34 = vrot.slane %v2431_v61, 1  ;;  %v2497_v37 = vsel %vm2404_vm5, %v520_v33, 0  ;;  %v2209_v61 = vld [vmem:[%s2757_s3 + $0x210] sm:$0xff]  }
  0x24   : > { %v1801_v40 = vcombine.low %v2488_v32, %v2497_v37  ;;  %v568_v54 = vshrl.u32 %v2497_v37, 16  ;;  %v570_v55 = vshll.u32 %v2497_v37, 16  ;;  %v607_v15 = vrot.slane %v2497_v37, 1 }
  0x25   : > { %1913 = vmatpush3.bf16.msra.mxu0 %v2165_v35  ;;  %v561_v35 = vshrl.u32 %v2488_v32, 16  ;;  %v2522_v53 = vcombine.low %v605_v34, %v606_v41 }
  0x26   : > { %1953 = vmatpush3.bf16.msra.mxu1 %v2166_v36  ;;  %1978 = vmatprep.subr.bf16.mxu0 %v2169_v47  ;;  %v563_v36 = vshll.u32 %v2488_v32, 16  ;;  %v1803_v59 = vcombine.low %v606_v41, %v607_v15 }
  0x27   : > { %2018 = vmatprep.subr.bf16.mxu1 %v2170_v50  ;;  %v472_v50 = vshll.u32 %v2187_v39, 16 }
  0x28   : > { %1329 = vmatmul.mubr.bf16.vlgmr.msra.gmra.mrb[0].mxu0 %v1792_v13  ;;  %v565_v47 = vrot.slane %v563_v36, 1  ;;  %v2191_v13 = vld [vmem:[%s2757_s3 + $0x120] sm:$0xff]   ;;  %v2199_v36 = vld [vmem:[%s2757_s3 + $0x170] sm:$0xff]  }
  0x29   : > { %1394 = vmatmul.mubr.bf16.vlgmr.msra.gmra.mrb[0].mxu1 %v1794_v6  ;;  %1979 = vmatpush3.bf16.msra.mxu0 %v2171_v10  ;;  %v474_v6 = vor.u32 %v472_v50, %v471_v58  ;;  %v2204_v58 = vld [vmem:[%s2757_s3 + $0x1f8] sm:$0xff]  }
  0x2a   : > { %2019 = vmatpush3.bf16.msra.mxu1 %v2172_v4  ;;  %1980 = vmatprep.subr.bf16.mxu0 %v2173_v14  ;;  %v2526_v56 = vor.u32 %v565_v47, %v561_v35  ;;  %v2189_v4 = vld [vmem:[%s2757_s3 + $0x160] sm:$0xff]   ;;  %v2198_v35 = vld [vmem:[%s2388_s12 + $0x1c] ss:$0 sps:$4 sm:$0xff]  }
  0x2b   : > { %2020 = vmatprep.subr.bf16.mxu1 %v2174_v7  ;;  %1401 = vmatprep.mubr.bf16.mxu1 %v1801_v40  ;;  %v478_v7 = vrot.slane %v476_v62, 7  ;;  %v521_v10 = vsel %vm2398_vm4, 0, %v474_v6  ;;  %v490_v48 = vshrl.u32 %v2198_v35, 16  ;;  %v493_v50 = vshll.u32 %v2198_v35, 16  ;;  %v2205_v6 = vld [vmem:[%s2757_s3 + $0x138] sm:$0xff]  }
  0x2c   : > { %v2544_v5 = vcombine.low %v2512_v45, %v2526_v56  ;;  %v2558_v14 = vsel %vm2404_vm5, %v521_v10, 0 }
  0x2d   : > { %1981 = vmatpush3.bf16.msra.mxu0 %v2175_v22  ;;  %v481_v12 = vor.u32 %v479_v63, %v478_v7  ;;  %v575_v16 = vshrl.u32 %v2558_v14, 16  ;;  %v577_v17 = vshll.u32 %v2558_v14, 16  ;;  %v2197_v22 = vld [vmem:[%s2388_s12 + $0x18] ss:$0 sps:$4 sm:$0xff]  }
  0x2e   : > { %2021 = vmatpush3.bf16.msra.mxu1 %v2176_v11  ;;  %1982 = vmatprep.subr.bf16.mxu0 %v2179_v26  ;;  %v572_v11 = vrot.slane %v570_v55, 1  ;;  %v2195_v26 = vld [vmem:[%s2757_s3 + $0x128] sm:$0xff]   ;;  %v483_v30 = vshrl.u32 %v2197_v22, 16  ;;  %v2206_v7 = vld [vmem:[%s2757_s3 + $0x1b8] sm:$0xff]  }
  0x2f   : > { %2022 = vmatprep.subr.bf16.mxu1 %v2180_v21  ;;  %1336 = vmatprep.mubr.bf16.mxu0 %v2544_v5  ;;  %v522_v18 = vsel %vm2398_vm4, 0, %v481_v12  ;;  %v608_v21 = vrot.slane %v2558_v14, 1  ;;  %v579_v24 = vrot.slane %v577_v17, 1  ;;  %v2207_v12 = vld [vmem:[%s2757_s3 + $0x200] sm:$0xff]  }
  0x30   : > { %1337 = vmatmul.mubr.bf16.gmra.mrb[4].mxu0 %v2536_v3  ;;  %v2570_v20 = vsel %vm2404_vm5, %v522_v18, 0  ;;  %v2574_v23 = vor.u32 %v572_v11, %v568_v54  ;;  %v485_v47 = vrot.slane %v483_v30, 7  ;;  %v2201_v54 = vld [vmem:[%s2757_s3 + $0x130] sm:$0xff]  }
  0x31   : > { %1402 = vmatmul.mubr.bf16.gmra.mrb[4].mxu1 %v2522_v53  ;;  %1983 = vmatpush3.bf16.msra.mxu0 %v2181_v38  ;;  %v1807_v25 = vcombine.low %v2558_v14, %v2570_v20  ;;  %v584_v28 = vshll.u32 %v2570_v20, 16  ;;  %v582_v33 = vshrl.u32 %v2570_v20, 16  ;;  %v2200_v38 = vld [vmem:[%s2757_s3 + $0x1f0] sm:$0xff]   ;;  %v2599_v39 = vor.u32 %v579_v24, %v575_v16 }
  0x32   : > { %2023 = vmatpush3.bf16.msra.mxu1 %v2182_v29  ;;  %1984 = vmatprep.subr.bf16.mxu0 %v2183_v43  ;;  %v2589_v29 = vcombine.low %v607_v15, %v608_v21  ;;  %v609_v43 = vrot.slane %v2570_v20, 1 }
  0x33   : > { %2024 = vmatprep.subr.bf16.mxu1 %v2184_v31  ;;  %v486_v31 = vshll.u32 %v2197_v22, 16  ;;  %1409 = vmatprep.mubr.bf16.mxu1 %v1807_v25  ;;  %v586_v40 = vrot.slane %v584_v28, 1  ;;  %v1797_v25 = vcombine.low %v604_v1, %v605_v34 }
  0x34   : > { %v1809_v41 = vcombine.low %v608_v21, %v609_v43  ;;  %v2213_v21 = vld [vmem:[%s2757_s3 + $0x230] sm:$0xff]  }
  0x35   : > { %1985 = vmatpush3.bf16.msra.mxu0 %v2185_v57  ;;  %v488_v55 = vor.u32 %v486_v31, %v485_v47  ;;  %v492_v57 = vrot.slane %v490_v48, 7  ;;  %v2646_v17 = vor.u32 %v586_v40, %v582_v33 }
  0x36   : > { %2025 = vmatpush3.bf16.msra.mxu1 %v2186_v44  ;;  %1986 = vmatprep.subr.bf16.mxu0 %v2189_v4  ;;  %v2604_v44 = vcombine.low %v2497_v37, %v2558_v14  ;;  %v1802_v37 = vcombine.low %v2526_v56, %v2574_v23  ;;  %v2212_v56 = vld [vmem:[%s2757_s3 + $0x228] sm:$0xff]  }
  0x37   : > { %2026 = vmatprep.subr.bf16.mxu1 %v2190_v52  ;;  %v1805_v52 = vcombine.low %v2574_v23, %v2599_v39  ;;  %v523_v62 = vsel %vm2398_vm4, 0, %v488_v55  ;;  %v495_v63 = vor.u32 %v493_v50, %v492_v57  ;;  %v1808_v15 = vcombine.low %v2599_v39, %v2646_v17  ;;  %v2214_v23 = vld [vmem:[%s2757_s3 + $0x238] sm:$0xff]  }
  0x38   : > { %v2626_v4 = vsel %vm2404_vm5, %v523_v62, 0 }
  0x39   : > { %1987 = vmatpush3.bf16.msra.mxu0 %v2191_v13  ;;  %1410 = vmatmul.mubr.bf16.gmra.mrb[8].mxu1 %v2589_v29  ;;  %v591_v10 = vshll.u32 %v2626_v4, 16  ;;  %v524_v11 = vsel %vm2398_vm4, 0, %v495_v63  ;;  %v610_v16 = vrot.slane %v2626_v4, 1  ;;  %v1810_v22 = vcombine.low %v2570_v20, %v2626_v4 }
  0x3a   : > { %2027 = vmatpush3.bf16.msra.mxu1 %v2192_v0  ;;  %1988 = vmatprep.subr.bf16.mxu0 %v2193_v19  ;;  %v2203_v0 = vld [vmem:[%s2757_s3 + $0x178] sm:$0xff]   ;;  %v2643_v13 = vsel %vm2404_vm5, %v524_v11, 0 }
  0x3b   : > { %2028 = vmatprep.subr.bf16.mxu1 %v2194_v8  ;;  %1344 = vmatprep.mubr.bf16.mxu0 %v1805_v52  ;;  %v589_v8 = vshrl.u32 %v2626_v4, 16  ;;  %v593_v18 = vrot.slane %v591_v10, 1  ;;  %v1813_v19 = vcombine.low %v2626_v4, %v2643_v13  ;;  %v2654_v42 = vcombine.low %v609_v43, %v610_v16 }
  0x3c   : > { %1345 = vmatmul.mubr.bf16.gmra.mrb[8].mxu0 %v2604_v44  ;;  %v614_v1 = vshll.u32 %v2643_v13, 16  ;;  %v612_v34 = vshrl.u32 %v2643_v13, 16 }
  0x3d   : > { %1989 = vmatpush3.bf16.msra.mxu0 %v2195_v26  ;;  %v2656_v46 = vor.u32 %v593_v18, %v589_v8  ;;  %1417 = vmatprep.mubr.bf16.mxu1 %v1813_v19  ;;  %v2208_v26 = vld [vmem:[%s2757_s3 + $0x208] sm:$0xff]  }
  0x3e   : > { %2029 = vmatpush3.bf16.msra.mxu1 %v2196_v27  ;;  %1990 = vmatprep.subr.bf16.mxu0 %v2199_v36  ;;  %v1796_v27 = vcombine.low %v2452_v9, %v2512_v45  ;;  %v2210_v9 = vld [vmem:[%s2757_s3 + $0x218] sm:$0xff]   ;;  %v616_v32 = vrot.slane %v614_v1, 1  ;;  %v2211_v45 = vld [vmem:[%s2757_s3 + $0x220] sm:$0xff]  }
  0x3f   : > { %2030 = vmatprep.subr.bf16.mxu1 %v2200_v38  ;;  %v1811_v24 = vcombine.low %v2646_v17, %v2656_v46 }
  0x41   : > { %1991 = vmatpush3.bf16.msra.mxu0 %v2201_v54  ;;  %1418 = vmatmul.mubr.bf16.gmra.mrb[12].mxu1 %v2654_v42 }
  0x42   : > { %2031 = vmatpush3.bf16.msra.mxu1 %v2202_v51  ;;  %1992 = vmatprep.subr.bf16.mxu0 %v2203_v0 }
  0x43   : > { %2032 = vmatprep.subr.bf16.mxu1 %v2204_v58  ;;  %1523 = vmatprep.mubr.bf16.mxu1 %v2544_v5  ;;  %v619_v5 = vrot.slane %v2643_v13, 1 }
  0x44   : > { %1352 = vmatprep.mubr.bf16.mxu0 %v1811_v24 }
  0x45   : > { %1993 = vmatpush3.bf16.msra.mxu0 %v2205_v6  ;;  %v1815_v20 = vcombine.low %v610_v16, %v619_v5  ;;  %v1818_v30 = vcombine.low %v619_v5, %v603_v60 }
  0x46   : > { %2033 = vmatpush3.bf16.msra.mxu1 %v2206_v7  ;;  %2070 = vmatprep.subr.bf16.mxu0 %v2207_v12 }
  0x47   : > { %2094 = vmatprep.subr.bf16.mxu1 %v2207_v12  ;;  %1353 = vmatmul.mubr.bf16.gmra.mrb[12].mxu0 %v1810_v22 }
  0x48   : > { %1458 = vmatprep.mubr.bf16.mxu0 %v1797_v25 }
  0x49   : > { %1524 = vmatmul.mubr.bf16.vlgmr.msra.gmra.mrb[16].mxu1 %v2536_v3  ;;  %v617_v3 = vor.u32 %v616_v32, %v612_v34 }
  0x4a   : > { %2102 = vmatpush3.bf16.msra.mxu1 %v2207_v12  ;;  %1531 = vmatprep.mubr.bf16.mxu1 %v1805_v52 }
  0x4b   : > { %2095 = vmatprep.subr.bf16.mxu1 %v2208_v26  ;;  %v1817_v14 = vcombine.low %v617_v3, %v2438_v2  ;;  %v1816_v2 = vcombine.low %v2643_v13, %v2413_v49  ;;  %v1814_v28 = vcombine.low %v2656_v46, %v617_v3  ;;  %v1791_v49 = vld [vmem:[%s2758_s4] ss:$0 sm:$0xff] }
  0x4e   : > { %2103 = vmatpush3.bf16.msra.mxu1 %v2208_v26 }
  0x4f   : > { %1459 = vmatmul.mubr.bf16.vlgmr.msra.gmra.mrb[16].mxu0 %v1796_v27  ;;  %2096 = vmatprep.subr.bf16.mxu1 %v2209_v61 }
  0x50   : > { %2071 = vmatpush3.bf16.msra.mxu0 %v2207_v12  ;;  %1466 = vmatprep.mubr.bf16.mxu0 %v1803_v59 }
  0x51   : > { %2072 = vmatprep.subr.bf16.mxu0 %v2208_v26  ;;  %1532 = vmatmul.mubr.bf16.gmra.mrb[20].mxu1 %v2604_v44 }
  0x52   : > { %2104 = vmatpush3.bf16.msra.mxu1 %v2209_v61  ;;  %1539 = vmatprep.mubr.bf16.mxu1 %v1811_v24 }
  0x53   : > { %2097 = vmatprep.subr.bf16.mxu1 %v2210_v9 }
  0x54   : > { %2073 = vmatpush3.bf16.msra.mxu0 %v2208_v26 }
  0x55   : > { %2074 = vmatprep.subr.bf16.mxu0 %v2209_v61 }
  0x56   : > { %2105 = vmatpush3.bf16.msra.mxu1 %v2210_v9 }
  0x57   : > { %1467 = vmatmul.mubr.bf16.gmra.mrb[20].mxu0 %v1802_v37  ;;  %2098 = vmatprep.subr.bf16.mxu1 %v2211_v45 }
  0x58   : > { %2075 = vmatpush3.bf16.msra.mxu0 %v2209_v61  ;;  %1474 = vmatprep.mubr.bf16.mxu0 %v1809_v41 }
  0x59   : > { %2076 = vmatprep.subr.bf16.mxu0 %v2210_v9  ;;  %1540 = vmatmul.mubr.bf16.gmra.mrb[24].mxu1 %v1810_v22 }
  0x5a   : > { %2106 = vmatpush3.bf16.msra.mxu1 %v2211_v45  ;;  %1547 = vmatprep.mubr.bf16.mxu1 %v1817_v14 }
  0x5b   : > { %2099 = vmatprep.subr.bf16.mxu1 %v2212_v56 }
  0x5c   : > { %2077 = vmatpush3.bf16.msra.mxu0 %v2210_v9 }
  0x5d   : > { %2078 = vmatprep.subr.bf16.mxu0 %v2211_v45 }
  0x5e   : > { %2107 = vmatpush3.bf16.msra.mxu1 %v2212_v56 }
  0x5f   : > { %1475 = vmatmul.mubr.bf16.gmra.mrb[24].mxu0 %v1808_v15  ;;  %2100 = vmatprep.subr.bf16.mxu1 %v2213_v21 }
  0x60   : > { %2079 = vmatpush3.bf16.msra.mxu0 %v2211_v45  ;;  %1482 = vmatprep.mubr.bf16.mxu0 %v1815_v20 }
  0x61   : > { %2080 = vmatprep.subr.bf16.mxu0 %v2212_v56  ;;  %1548 = vmatmul.mubr.bf16.gmra.mrb[28].mxu1 %v1816_v2 }
  0x62   : > { %2108 = vmatpush3.bf16.msra.mxu1 %v2213_v21  ;;  %2090 = vmatprep.mubr.bf16.mxu1 %v2654_v42 }
  0x63   : > { %2101 = vmatprep.subr.bf16.mxu1 %v2214_v23 }
  0x64   : > { %2081 = vmatpush3.bf16.msra.mxu0 %v2212_v56 }
  0x65   : > { %2082 = vmatprep.subr.bf16.mxu0 %v2213_v21 }
  0x66   : > { %2109 = vmatpush3.bf16.msra.mxu1 %v2214_v23 }
  0x67   : > { %1483 = vmatmul.mubr.bf16.gmra.mrb[28].mxu0 %v1814_v28 }
  0x68   : > { %2083 = vmatpush3.bf16.msra.mxu0 %v2213_v21  ;;  %2086 = vmatprep.mubr.bf16.mxu0 %v2522_v53 }
  0x69   : > { %2084 = vmatprep.subr.bf16.mxu0 %v2214_v23  ;;  %2091 = vmatmul.mubr.bf16.vlgmr.msra.gmra.mrb[32].mxu1 %v1818_v30 }
  0x6c   : > { %2085 = vmatpush3.bf16.msra.mxu0 %v2214_v23 }
  0x6f   : > { %2087 = vmatmul.mubr.bf16.vlgmr.msra.gmra.mrb[32].mxu0 %v2589_v29 }
  0xfb   : > { %v1914_v39 = vpop.f32.mrb[0].mxu0 }
  0xfc   : > { %v1954_v31 = vpop.f32.mrb[0].mxu1  ;;  %v1915_v60 = vpop.f32.mrb[1].mxu0 }
  0xfd   : > { %v1955_v33 = vpop.f32.mrb[1].mxu1  ;;  %v1916_v43 = vadd.f32 %v1915_v60, %v1914_v39  ;;  %v1917_v44 = vpop.f32.mrb[2].mxu0 }
  0xfe   : > { %v1956_v35 = vadd.f32 %v1955_v33, %v1954_v31  ;;  %v1957_v36 = vpop.f32.mrb[2].mxu1  ;;  %v1918_v47 = vpop.f32.mrb[3].mxu0 }
  0xff   : > { %v1958_v38 = vpop.f32.mrb[3].mxu1  ;;  %v1331_v53 = vadd.f32 %v1916_v43, %v1791_v49  ;;  %v1919_v48 = vadd.f32 %v1918_v47, %v1917_v44 }
 0x100   : > { %v1959_v40 = vadd.f32 %v1958_v38, %v1957_v36 }
 0x101   : > { %v1396_v50 = vadd.f32 %v1956_v35, %v1331_v53  ;;  %v1334_v51 = vadd.f32 %v1919_v48, %v1791_v49 }
 0x103   : > { %v2722_v29 = vadd.f32 %v1959_v40, %v1334_v51  ;;  %v1920_v62 = vpop.f32.mrb[4].mxu0 }
 0x104   : > { %v1960_v52 = vpop.f32.mrb[4].mxu1  ;;  %v1921_v0 = vpop.f32.mrb[5].mxu0 }
 0x105   : > { %v1961_v54 = vpop.f32.mrb[5].mxu1  ;;  %v1922_v4 = vadd.f32 %v1921_v0, %v1920_v62  ;;  %v1923_v6 = vpop.f32.mrb[6].mxu0 }
 0x106   : > { %v1962_v55 = vadd.f32 %v1961_v54, %v1960_v52  ;;  %v1963_v57 = vpop.f32.mrb[6].mxu1  ;;  %v1924_v7 = vpop.f32.mrb[7].mxu0 }
 0x107   : > { %v1964_v58 = vpop.f32.mrb[7].mxu1  ;;  %v1339_v8 = vadd.f32 %v1922_v4, %v1791_v49  ;;  %v1925_v10 = vadd.f32 %v1924_v7, %v1923_v6 }
 0x108   : > { %v1965_v63 = vadd.f32 %v1964_v58, %v1963_v57 }
 0x109   : > { %v1404_v11 = vadd.f32 %v1962_v55, %v1339_v8  ;;  %v1342_v12 = vadd.f32 %v1925_v10, %v1791_v49 }
 0x10b   : > { %v1407_v17 = vadd.f32 %v1965_v63, %v1342_v12 }
 0x10c   : > { %v1966_v13 = vpop.f32.mrb[8].mxu1 }
 0x10d   : > { %v1967_v16 = vpop.f32.mrb[9].mxu1 }
 0x10e   : > { %v1968_v18 = vadd.f32 %v1967_v16, %v1966_v13  ;;  %v1969_v19 = vpop.f32.mrb[10].mxu1 }
 0x10f   : > { %v1970_v42 = vpop.f32.mrb[11].mxu1  ;;  %v1926_v46 = vpop.f32.mrb[8].mxu0 }
 0x110   : > { %v1971_v22 = vadd.f32 %v1970_v42, %v1969_v19  ;;  %v1927_v24 = vpop.f32.mrb[9].mxu0 }
 0x111   : > { %v1928_v25 = vadd.f32 %v1927_v24, %v1926_v46  ;;  %v1929_v26 = vpop.f32.mrb[10].mxu0 }
 0x112   : > { %v1930_v27 = vpop.f32.mrb[11].mxu0 }
 0x113   : > { %v1347_v59 = vadd.f32 %v1928_v25, %v1791_v49  ;;  %v1931_v61 = vadd.f32 %v1930_v27, %v1929_v26 }
 0x114   : > { %v1972_v34 = vpop.f32.mrb[12].mxu1 }
 0x115   : > { %v1412_v1 = vadd.f32 %v1968_v18, %v1347_v59  ;;  %v1350_v9 = vadd.f32 %v1931_v61, %v1791_v49  ;;  %v1973_v37 = vpop.f32.mrb[13].mxu1 }
 0x116   : > { %v1974_v41 = vadd.f32 %v1973_v37, %v1972_v34  ;;  %v1975_v45 = vpop.f32.mrb[14].mxu1 }
 0x117   : > { %v2724_v32 = vadd.f32 %v1971_v22, %v1350_v9  ;;  %v1976_v3 = vpop.f32.mrb[15].mxu1 }
 0x118   : > { %v1977_v5 = vadd.f32 %v1976_v3, %v1975_v45 }
 0x11a   : > { %v1932_v56 = vpop.f32.mrb[12].mxu0 }
 0x11b   : > { %v1933_v14 = vpop.f32.mrb[13].mxu0 }
 0x11c   : > { %v1934_v15 = vadd.f32 %v1933_v14, %v1932_v56  ;;  %v1935_v20 = vpop.f32.mrb[14].mxu0  ;;  %v2034_v28 = vpop.f32.mrb[16].mxu1 }
 0x11d   : > { %v1936_v21 = vpop.f32.mrb[15].mxu0  ;;  %v2035_v30 = vpop.f32.mrb[17].mxu1 }
 0x11e   : > { %v1355_v2 = vadd.f32 %v1934_v15, %v1791_v49  ;;  %v1937_v23 = vadd.f32 %v1936_v21, %v1935_v20  ;;  %v2036_v35 = vadd.f32 %v2035_v30, %v2034_v28  ;;  %v2037_v36 = vpop.f32.mrb[18].mxu1 }
 0x11f   : > { %v2038_v38 = vpop.f32.mrb[19].mxu1 }
 0x120   : > { %v1420_v31 = vadd.f32 %v1974_v41, %v1355_v2  ;;  %v1358_v33 = vadd.f32 %v1937_v23, %v1791_v49  ;;  %v2039_v60 = vadd.f32 %v2038_v38, %v2037_v36 }
 0x122   : > { %v1423_v39 = vadd.f32 %v1977_v5, %v1358_v33  ;;  %v1994_v40 = vpop.f32.mrb[16].mxu0 }
 0x123   : > { %v1995_v43 = vpop.f32.mrb[17].mxu0 }
 0x124   : > { %v1996_v44 = vadd.f32 %v1995_v43, %v1994_v40  ;;  %v1997_v47 = vpop.f32.mrb[18].mxu0  ;;  %v2040_v52 = vpop.f32.mrb[20].mxu1 }
 0x125   : > { %v1998_v53 = vpop.f32.mrb[19].mxu0  ;;  %v2041_v54 = vpop.f32.mrb[21].mxu1 }
 0x126   : > { %v1461_v48 = vadd.f32 %v1996_v44, %v1396_v50  ;;  %v1999_v51 = vadd.f32 %v1998_v53, %v1997_v47  ;;  %v2042_v57 = vadd.f32 %v2041_v54, %v2040_v52  ;;  %v2043_v58 = vpop.f32.mrb[22].mxu1 }
 0x127   : > { %v2044_v49 = vpop.f32.mrb[23].mxu1 }
 0x128   : > { %v1464_v55 = vadd.f32 %v1999_v51, %v2722_v29  ;;  %v1526_v62 = vadd.f32 %v2036_v35, %v1461_v48  ;;  %v2045_v0 = vadd.f32 %v2044_v49, %v2043_v58 }
 0x12a   : > { %v2000_v63 = vpop.f32.mrb[20].mxu0  ;;  %v2727_v4 = vadd.f32 %v2039_v60, %v1464_v55 }
 0x12b   : > { %v2001_v6 = vpop.f32.mrb[21].mxu0 }
 0x12c   : > { %v2002_v7 = vadd.f32 %v2001_v6, %v2000_v63  ;;  %v2003_v8 = vpop.f32.mrb[22].mxu0  ;;  %v2046_v50 = vpop.f32.mrb[24].mxu1 }
 0x12d   : > { %v2004_v10 = vpop.f32.mrb[23].mxu0  ;;  %v2047_v16 = vpop.f32.mrb[25].mxu1 }
 0x12e   : > { %v1469_v12 = vadd.f32 %v2002_v7, %v1404_v11  ;;  %v2005_v13 = vadd.f32 %v2004_v10, %v2003_v8  ;;  %v2048_v19 = vadd.f32 %v2047_v16, %v2046_v50  ;;  %v2049_v42 = vpop.f32.mrb[26].mxu1 }
 0x12f   : > { %v2050_v46 = vpop.f32.mrb[27].mxu1 }
 0x130   : > { %v1472_v18 = vadd.f32 %v2005_v13, %v1407_v17  ;;  %v1534_v29 = vadd.f32 %v2042_v57, %v1469_v12  ;;  %v2051_v24 = vadd.f32 %v2050_v46, %v2049_v42 }
 0x132   : > { %v2006_v22 = vpop.f32.mrb[24].mxu0  ;;  %v1537_v25 = vadd.f32 %v2045_v0, %v1472_v18 }
 0x133   : > { %v2007_v26 = vpop.f32.mrb[25].mxu0 }
 0x134   : > { %v2008_v27 = vadd.f32 %v2007_v26, %v2006_v22  ;;  %v2009_v59 = vpop.f32.mrb[26].mxu0  ;;  %v2052_v37 = vpop.f32.mrb[28].mxu1 }
 0x135   : > { %v2010_v61 = vpop.f32.mrb[27].mxu0  ;;  %v2053_v41 = vpop.f32.mrb[29].mxu1 }
 0x136   : > { %v1477_v9 = vadd.f32 %v2008_v27, %v1412_v1  ;;  %v2011_v34 = vadd.f32 %v2010_v61, %v2009_v59  ;;  %v2054_v45 = vadd.f32 %v2053_v41, %v2052_v37  ;;  %v2055_v17 = vpop.f32.mrb[30].mxu1 }
 0x137   : > { %v2056_v56 = vpop.f32.mrb[31].mxu1 }
 0x138   : > { %v1480_v11 = vadd.f32 %v2011_v34, %v2724_v32  ;;  %v1542_v3 = vadd.f32 %v2048_v19, %v1477_v9  ;;  %v2057_v14 = vadd.f32 %v2056_v56, %v2055_v17 }
 0x13a   : > { %v2012_v5 = vpop.f32.mrb[28].mxu0  ;;  %v1545_v15 = vadd.f32 %v2051_v24, %v1480_v11 }
 0x13b   : > { %v2013_v20 = vpop.f32.mrb[29].mxu0 }
 0x13c   : > { %v2014_v21 = vadd.f32 %v2013_v20, %v2012_v5  ;;  %v2015_v2 = vpop.f32.mrb[30].mxu0  ;;  %v2092_v1 = vpop.f32.mrb[32].mxu1 }
 0x13d   : > { %v2016_v23 = vpop.f32.mrb[31].mxu0  ;;  %v1606_v33 = vpop.f32.mrb[33].mxu1 }
 0x13e   : > { %v1485_v28 = vadd.f32 %v2014_v21, %v1420_v31  ;;  %v2017_v30 = vadd.f32 %v2016_v23, %v2015_v2  ;;  %v1607_v32 = vadd.f32 %v1606_v33, %v1542_v3  ;;  %v2093_v38 = vpop.f32.mrb[34].mxu1 }
 0x13f   : > { %v1609_v40 = vpop.f32.mrb[35].mxu1 }
 0x140   : > { %v1488_v35 = vadd.f32 %v2017_v30, %v1423_v39  ;;  %v1550_v36 = vadd.f32 %v2054_v45, %v1485_v28  ;;  %v1625_v44 = vmul.f32 0.01, %v1607_v32  ;;  %v1610_v53 = vadd.f32 %v1609_v40, %v1545_v15 }
 0x142   : > { %v2088_v60 = vpop.f32.mrb[32].mxu0  ;;  %v1615_v43 = vadd.f32 %v2092_v1, %v1550_v36  ;;  %v1553_v47 = vadd.f32 %v2057_v14, %v1488_v35  ;;  %v1633_v52 = vmax.f32 %v1607_v32, %v1625_v44  ;;  %v1626_v63 = vmul.f32 0.01, %v1610_v53 }
 0x143   : > { %v1599_v31 = vadd.f32 %v2088_v60, %v1534_v29  ;;  %v1590_v48 = vpop.f32.mrb[33].mxu0 }
 0x144   : > { %v1627_v51 = vmul.f32 0.01, %v1615_v43  ;;  %v1591_v39 = vadd.f32 %v1590_v48, %v1526_v62  ;;  %v2089_v54 = vpop.f32.mrb[34].mxu0  ;;  %v1618_v55 = vadd.f32 %v2093_v38, %v1553_v47  ;;  %1641 = vst [vmem:[%s2734_s11 + $0x20] sm:$0xff] %v1633_v52  ;;  %v1634_v12 = vmax.f32 %v1610_v53, %v1626_v63 }
 0x145   : > { %v1623_v57 = vmul.f32 0.01, %v1599_v31  ;;  %v1602_v58 = vadd.f32 %v2089_v54, %v1537_v25  ;;  %v1593_v49 = vpop.f32.mrb[35].mxu0 }
 0x146   : > { %v1635_v0 = vmax.f32 %v1615_v43, %v1627_v51  ;;  %v1621_v6 = vmul.f32 0.01, %v1591_v39  ;;  %v1628_v7 = vmul.f32 0.01, %v1618_v55  ;;  %v1594_v62 = vadd.f32 %v1593_v49, %v2727_v4  ;;  %1642 = vst [vmem:[%s2734_s11 + $0x28] sm:$0xff] %v1634_v12 }
 0x147   : > { %v1631_v8 = vmax.f32 %v1599_v31, %v1623_v57  ;;  %v1624_v10 = vmul.f32 0.01, %v1602_v58 }
 0x148   : > { %1643 = vst [vmem:[%s2734_s11 + $0x30] sm:$0xff] %v1635_v0  ;;  %v1629_v13 = vmax.f32 %v1591_v39, %v1621_v6  ;;  %v1636_v50 = vmax.f32 %v1618_v55, %v1628_v7  ;;  %v1622_v16 = vmul.f32 0.01, %v1594_v62 }
 0x149   : > { %1639 = vst [vmem:[%s2734_s11 + $0x10] sm:$0xff] %v1631_v8  ;;  %v1632_v18 = vmax.f32 %v1602_v58, %v1624_v10 }
 0x14a   : > { %1637 = vst [vmem:[%s2734_s11] sm:$0xff] %v1629_v13  ;;  %1644 = vst [vmem:[%s2734_s11 + $0x38] sm:$0xff] %v1636_v50  ;;  %v1630_v19 = vmax.f32 %v1594_v62, %v1622_v16 }
 0x14b   : > { %1640 = vst [vmem:[%s2734_s11 + $0x18] sm:$0xff] %v1632_v18 }
 0x14c   : > { %1638 = vst [vmem:[%s2734_s11 + $0x8] sm:$0xff] %v1630_v19 }
 0x14d PF: > { %s15_s0 = sadd.s32 1, %s2237_s0   ;;  %s2764_s18 = smov %s2233_s19 }
 0x14e   : > { %p12_p5 = scmp.ge.s32.totalorder %s15_s0, 4   ;;  %s2765_s19 = smov %s2767_s2 }
 0x150   :  { %14 = sbr.rel (!%p12_p5) target bundleno = 2 (0x2), region = 76 }

</bundles_post_ra>
